<compile_context>
chip_gen: v7x
topology: tpu7x:2x2x1
jax: 0.10.0
libtpu: 0.0.40
codegen_flags: <defaults>
</compile_context>

<pallas_src>
import math
import jax
import jax.numpy as jnp
from jax import lax
from jax.experimental import pallas as pl
from jax.experimental.pallas import tpu as pltpu

D_MODEL = 128
N_HEADS = 4
D_HEAD = D_MODEL // N_HEADS
D_FF = 512
LN_EPS = 1e-6
VMEM_LIMIT = 48 * 1024 * 1024      # <= 64 MiB physical VMEM on v7x


# ------------------------------------------------------------------ helpers ---

def _layer_norm(x, gamma, beta, eps=LN_EPS):
    # Spec LayerNorm: gamma*(x-mean)/(std+eps)+beta, torch std is unbiased (N-1).
    # One-pass statistics, kept in f32.
    d = x.shape[-1]
    mu = jnp.mean(x, axis=-1, keepdims=True)
    ex2 = jnp.mean(x * x, axis=-1, keepdims=True)
    var = jnp.maximum(ex2 - mu * mu, 0.0) * (d / (d - 1.0))
    std = jnp.sqrt(var)
    return gamma * (x - mu) / (std + eps) + beta


def _full_spec(shape):
    return pl.BlockSpec(shape, lambda *_: (0,) * len(shape))


# ------------------------------------------------------------------- kernel ---

def encoder_layer_kernel(x_ref, mkeep_ref,
                         g1_ref, be1_ref, wqkv_ref, bqkv_ref, wo_ref, bo_ref,
                         g2_ref, be2_ref, w1_ref, b1_ref, w2_ref, b2_ref,
                         o_ref):
    x = x_ref[0]                                          # (S, D) f32
    S = x.shape[0]

    # ---- sublayer 0: x + self_attn(norm(x), norm(x), norm(x), mask) ----
    xn = _layer_norm(x, g1_ref[...], be1_ref[...])        # f32
    # Fused QKV projection: one (S,128)@(128,384) bf16 MXU matmul.
    qkv = jnp.dot(xn.astype(jnp.bfloat16), wqkv_ref[...],
                  preferred_element_type=jnp.float32) + bqkv_ref[...]
    q = qkv[:, 0 * D_MODEL:1 * D_MODEL].astype(jnp.bfloat16)
    k = qkv[:, 1 * D_MODEL:2 * D_MODEL].astype(jnp.bfloat16)
    v = qkv[:, 2 * D_MODEL:3 * D_MODEL].astype(jnp.bfloat16)

    # Additive mask bias hoisted out of the head loop (masked_fill(mask==0,-1e9)).
    mkeep = mkeep_ref[0]                                  # (1, S) 1.0=keep
    bias = jnp.broadcast_to(jnp.where(mkeep > 0.5, 0.0, -1e9), (S, S))
    scale = 1.0 / math.sqrt(D_HEAD)

    wo = wo_ref[...]                                      # (D, D) bf16, resident
    attn = jnp.zeros_like(x)                              # (S, D) f32 accumulator
    for h in range(N_HEADS):                              # static head loop
        sl = slice(h * D_HEAD, (h + 1) * D_HEAD)
        qh, kh, vh = q[:, sl], k[:, sl], v[:, sl]
        # q @ k^T without an explicit transpose: contract both on the head dim.
        s = lax.dot_general(qh, kh, (((1,), (1,)), ((), ())),
                            preferred_element_type=jnp.float32)
        s = s * scale + bias
        m = jnp.max(s, axis=-1, keepdims=True)
        e = jnp.exp(s - m)
        p = e * pl.reciprocal(jnp.sum(e, axis=-1, keepdims=True), approx=True)
        head = jnp.dot(p.astype(jnp.bfloat16), vh,
                       preferred_element_type=jnp.float32)          # (S, D_HEAD)
        # Fold the output projection into the head loop: accumulate through the
        # matching 32-row (sublane) slice of wo -> no concat, N stays 128.
        attn += jnp.dot(head.astype(jnp.bfloat16), wo[sl, :],
                        preferred_element_type=jnp.float32)
    # TODO(synk): dropout in SublayerConnection is identity here (eval mode).
    x1 = x + attn + bo_ref[...]                           # (S, D) f32

    # ---- sublayer 1: x + feed_forward(norm(x)) (fused, no HBM round-trip) ----
    xn2 = _layer_norm(x1, g2_ref[...], be2_ref[...])
    hdn = jnp.dot(xn2.astype(jnp.bfloat16), w1_ref[...],
                  preferred_element_type=jnp.float32) + b1_ref[...]
    hdn = jnp.maximum(hdn, 0.0)
    y = jnp.dot(hdn.astype(jnp.bfloat16), w2_ref[...],
                preferred_element_type=jnp.float32) + b2_ref[...]
    o_ref[0] = x1 + y


# ------------------------------------------------------------------ wrapper ---

def encoder_layer_forward(params, x, mask):
    # TODO(synk): self_attn / feed_forward are injected nn.Modules; standard
    # multi-head attention and Linear->ReLU->Linear stand-ins are used.
    B, S, D = x.shape
    mkeep = mask.astype(jnp.float32).reshape(B, 1, S)
    row = lambda a: a.reshape(1, -1)
    bf = lambda a: a.astype(jnp.bfloat16)
    # Fused QKV weight/bias packing (q|k|v along the output dim).
    wqkv = bf(jnp.concatenate([params['wq'], params['wk'], params['wv']], axis=1))
    bqkv = row(jnp.concatenate([params['bq'], params['bk'], params['bv']], axis=0))

    # NOTE(v7x): grid=(B,) with B>=2 keeps both TensorCores busy via the
    # "parallel" dimension semantics; for B==1 an S-tile axis should be added.
    return pl.pallas_call(
        encoder_layer_kernel,
        grid=(B,),
        in_specs=[pl.BlockSpec((1, S, D), lambda b: (b, 0, 0)),
                  pl.BlockSpec((1, 1, S), lambda b: (b, 0, 0)),
                  _full_spec((1, D)), _full_spec((1, D)),
                  _full_spec((D, 3 * D)), _full_spec((1, 3 * D)),
                  _full_spec((D, D)), _full_spec((1, D)),
                  _full_spec((1, D)), _full_spec((1, D)),
                  _full_spec((D, D_FF)), _full_spec((1, D_FF)),
                  _full_spec((D_FF, D)), _full_spec((1, D))],
        out_specs=pl.BlockSpec((1, S, D), lambda b: (b, 0, 0)),
        out_shape=jax.ShapeDtypeStruct((B, S, D), jnp.float32),
        compiler_params=pltpu.CompilerParams(
            dimension_semantics=("parallel",),
            vmem_limit_bytes=VMEM_LIMIT),
    )(x, mkeep,
      row(params['ln1_g']), row(params['ln1_b']),
      wqkv, bqkv, bf(params['wo']), row(params['bo']),
      row(params['ln2_g']), row(params['ln2_b']),
      bf(params['w1']), row(params['b1']),
      bf(params['w2']), row(params['b2']))


# ---------------------------------------------------------------- reference ---

def reference_forward(p, x, mask):
    def ln(v, g, b):
        mu = v.mean(-1, keepdims=True)
        std = jnp.sqrt(jnp.sum((v - mu) ** 2, -1, keepdims=True) / (v.shape[-1] - 1))
        return g * (v - mu) / (std + LN_EPS) + b

    B, S, D = x.shape
    xn = ln(x, p['ln1_g'], p['ln1_b'])
    q = (xn @ p['wq'] + p['bq']).reshape(B, S, N_HEADS, D_HEAD).transpose(0, 2, 1, 3)
    k = (xn @ p['wk'] + p['bk']).reshape(B, S, N_HEADS, D_HEAD).transpose(0, 2, 1, 3)
    v = (xn @ p['wv'] + p['bv']).reshape(B, S, N_HEADS, D_HEAD).transpose(0, 2, 1, 3)
    s = jnp.einsum('bhqd,bhkd->bhqk', q, k) / math.sqrt(D_HEAD)
    s = jnp.where(mask[:, None, :, :], s, -1e9)
    a = jax.nn.softmax(s, axis=-1)
    ctx = jnp.einsum('bhqk,bhkd->bhqd', a, v).transpose(0, 2, 1, 3).reshape(B, S, D)
    x = x + ctx @ p['wo'] + p['bo']
    xn2 = ln(x, p['ln2_g'], p['ln2_b'])
    h = jax.nn.relu(xn2 @ p['w1'] + p['b1'])
    return x + h @ p['w2'] + p['b2']


# --------------------------------------------------------------------- main ---

def _init_linear(key, din, dout, scale=0.02):
    kw, kb = jax.random.split(key)
    return (scale * jax.random.normal(kw, (din, dout), jnp.float32),
            scale * jax.random.normal(kb, (dout,), jnp.float32))


if __name__ == "__main__":
    key = jax.random.PRNGKey(0)
    ks = jax.random.split(key, 8)

    wq, bq = _init_linear(ks[0], D_MODEL, D_MODEL)
    wk, bk = _init_linear(ks[1], D_MODEL, D_MODEL)
    wv, bv = _init_linear(ks[2], D_MODEL, D_MODEL)
    wo, bo = _init_linear(ks[3], D_MODEL, D_MODEL)
    w1, b1 = _init_linear(ks[4], D_MODEL, D_FF)
    w2, b2 = _init_linear(ks[5], D_FF, D_MODEL)
    params = {
        'wq': wq, 'bq': bq, 'wk': wk, 'bk': bk,
        'wv': wv, 'bv': bv, 'wo': wo, 'bo': bo,
        'w1': w1, 'b1': b1, 'w2': w2, 'b2': b2,
        'ln1_g': jnp.ones((D_MODEL,), jnp.float32),
        'ln1_b': jnp.zeros((D_MODEL,), jnp.float32),
        'ln2_g': jnp.ones((D_MODEL,), jnp.float32),
        'ln2_b': jnp.zeros((D_MODEL,), jnp.float32),
    }

    B, S = 2, 16
    x = jax.random.normal(ks[6], (B, S, D_MODEL), jnp.float32)
    mask = jnp.ones((B, 1, S), dtype=bool).at[1, 0, S - 3:].set(False)

    out = jax.jit(encoder_layer_forward)(params, x, mask)
    out = jax.block_until_ready(out)

    ref = reference_forward(params, x, mask)
    assert out.shape == (B, S, D_MODEL)
    assert bool(jnp.all(jnp.isfinite(out)))
    # bf16 MXU operands vs f32 reference -> bf16-level tolerance.
    assert bool(jnp.allclose(out, ref, atol=1e-2, rtol=1e-2))
    print("KERNEL_OK")
</pallas_src>

<mosaic_0001>
module attributes {stable_mosaic.version = 11 : i64} {
  func.func @encoder_layer_kernel(%arg0: i32, %arg1: memref<1x16x128xf32, #tpu.memory_space<vmem>>, %arg2: memref<1x1x16xf32, #tpu.memory_space<vmem>>, %arg3: memref<1x128xf32, #tpu.memory_space<vmem>>, %arg4: memref<1x128xf32, #tpu.memory_space<vmem>>, %arg5: memref<128x384xbf16, #tpu.memory_space<vmem>>, %arg6: memref<1x384xf32, #tpu.memory_space<vmem>>, %arg7: memref<128x128xbf16, #tpu.memory_space<vmem>>, %arg8: memref<1x128xf32, #tpu.memory_space<vmem>>, %arg9: memref<1x128xf32, #tpu.memory_space<vmem>>, %arg10: memref<1x128xf32, #tpu.memory_space<vmem>>, %arg11: memref<128x512xbf16, #tpu.memory_space<vmem>>, %arg12: memref<1x512xf32, #tpu.memory_space<vmem>>, %arg13: memref<512x128xbf16, #tpu.memory_space<vmem>>, %arg14: memref<1x128xf32, #tpu.memory_space<vmem>>, %arg15: memref<1x16x128xf32, #tpu.memory_space<vmem>>) attributes {dimension_semantics = [#tpu.dimension_semantics<parallel>], iteration_bounds = array<i64: 2>, scalar_prefetch = 0 : i64, scratch_operands = 0 : i64, tpu.core_type = #tpu.core_type<tc>, window_params = [{transform_indices = @transform_0, window_bounds = array<i64: 1, 16, 128>}, {transform_indices = @transform_1, window_bounds = array<i64: 1, 1, 16>}, {pipeline_mode = #tpu.pipeline_mode<synchronous>, transform_indices = @transform_2, window_bounds = array<i64: 1, 128>}, {pipeline_mode = #tpu.pipeline_mode<synchronous>, transform_indices = @transform_3, window_bounds = array<i64: 1, 128>}, {pipeline_mode = #tpu.pipeline_mode<synchronous>, transform_indices = @transform_4, window_bounds = array<i64: 128, 384>}, {pipeline_mode = #tpu.pipeline_mode<synchronous>, transform_indices = @transform_5, window_bounds = array<i64: 1, 384>}, {pipeline_mode = #tpu.pipeline_mode<synchronous>, transform_indices = @transform_6, window_bounds = array<i64: 128, 128>}, {pipeline_mode = #tpu.pipeline_mode<synchronous>, transform_indices = @transform_7, window_bounds = array<i64: 1, 128>}, {pipeline_mode = #tpu.pipeline_mode<synchronous>, transform_indices = @transform_8, window_bounds = array<i64: 1, 128>}, {pipeline_mode = #tpu.pipeline_mode<synchronous>, transform_indices = @transform_9, window_bounds = array<i64: 1, 128>}, {pipeline_mode = #tpu.pipeline_mode<synchronous>, transform_indices = @transform_10, window_bounds = array<i64: 128, 512>}, {pipeline_mode = #tpu.pipeline_mode<synchronous>, transform_indices = @transform_11, window_bounds = array<i64: 1, 512>}, {pipeline_mode = #tpu.pipeline_mode<synchronous>, transform_indices = @transform_12, window_bounds = array<i64: 512, 128>}, {pipeline_mode = #tpu.pipeline_mode<synchronous>, transform_indices = @transform_13, window_bounds = array<i64: 1, 128>}, {transform_indices = @transform_14, window_bounds = array<i64: 1, 16, 128>}]} {
    %c0 = arith.constant 0 : index
    %c0_0 = arith.constant 0 : index
    %c0_1 = arith.constant 0 : index
    %0 = vector.load %arg1[%c0, %c0_0, %c0_1] : memref<1x16x128xf32, #tpu.memory_space<vmem>>, vector<1x16x128xf32>
    %1 = vector.shape_cast %0 : vector<1x16x128xf32> to vector<16x128xf32>
    %c0_2 = arith.constant 0 : index
    %c0_3 = arith.constant 0 : index
    %2 = vector.load %arg3[%c0_2, %c0_3] : memref<1x128xf32, #tpu.memory_space<vmem>>, vector<1x128xf32>
    %c0_4 = arith.constant 0 : index
    %c0_5 = arith.constant 0 : index
    %3 = vector.load %arg4[%c0_4, %c0_5] : memref<1x128xf32, #tpu.memory_space<vmem>>, vector<1x128xf32>
    %cst = arith.constant dense<0.000000e+00> : vector<16xf32>
    %4 = vector.multi_reduction <add>, %1, %cst [1] : vector<16x128xf32> to vector<16xf32>
    %5 = vector.shape_cast %4 : vector<16xf32> to vector<16x1xf32>
    %cst_6 = arith.constant 1.280000e+02 : f32
    %6 = vector.broadcast %cst_6 : f32 to vector<16x1xf32>
    %7 = arith.divf %5, %6 : vector<16x1xf32>
    %8 = arith.mulf %1, %1 : vector<16x128xf32>
    %cst_7 = arith.constant dense<0.000000e+00> : vector<16xf32>
    %9 = vector.multi_reduction <add>, %8, %cst_7 [1] : vector<16x128xf32> to vector<16xf32>
    %10 = vector.shape_cast %9 : vector<16xf32> to vector<16x1xf32>
    %cst_8 = arith.constant 1.280000e+02 : f32
    %11 = vector.broadcast %cst_8 : f32 to vector<16x1xf32>
    %12 = arith.divf %10, %11 : vector<16x1xf32>
    %13 = arith.mulf %7, %7 : vector<16x1xf32>
    %14 = arith.subf %12, %13 : vector<16x1xf32>
    %cst_9 = arith.constant 0.000000e+00 : f32
    %15 = vector.broadcast %cst_9 : f32 to vector<16x1xf32>
    %16 = arith.maximumf %14, %15 : vector<16x1xf32>
    %cst_10 = arith.constant 1.00787401 : f32
    %17 = vector.broadcast %cst_10 : f32 to vector<16x1xf32>
    %18 = arith.mulf %16, %17 : vector<16x1xf32>
    %19 = math.sqrt %18 : vector<16x1xf32>
    %20 = vector.broadcast %7 : vector<16x1xf32> to vector<16x128xf32>
    %21 = arith.subf %1, %20 : vector<16x128xf32>
    %22 = vector.broadcast %2 : vector<1x128xf32> to vector<16x128xf32>
    %23 = arith.mulf %22, %21 : vector<16x128xf32>
    %cst_11 = arith.constant 9.99999997E-7 : f32
    %24 = vector.broadcast %cst_11 : f32 to vector<16x1xf32>
    %25 = arith.addf %19, %24 : vector<16x1xf32>
    %26 = vector.broadcast %25 : vector<16x1xf32> to vector<16x128xf32>
    %27 = arith.divf %23, %26 : vector<16x128xf32>
    %28 = vector.broadcast %3 : vector<1x128xf32> to vector<16x128xf32>
    %29 = arith.addf %27, %28 : vector<16x128xf32>
    %30 = arith.truncf %29 : vector<16x128xf32> to vector<16x128xbf16>
    %c0_12 = arith.constant 0 : index
    %c0_13 = arith.constant 0 : index
    %31 = vector.load %arg5[%c0_12, %c0_13] : memref<128x384xbf16, #tpu.memory_space<vmem>>, vector<128x384xbf16>
    %cst_14 = arith.constant dense<0.000000e+00> : vector<16x384xf32>
    %32 = tpu.matmul %30, %31, %cst_14 {dimension_numbers = #tpu.dot_dimension_numbers<[1], [0], [0], [1], [0, 0, 1, 1], [], []>} : vector<16x128xbf16>, vector<128x384xbf16>, vector<16x384xf32> -> vector<16x384xf32>
    %c0_15 = arith.constant 0 : index
    %c0_16 = arith.constant 0 : index
    %33 = vector.load %arg6[%c0_15, %c0_16] : memref<1x384xf32, #tpu.memory_space<vmem>>, vector<1x384xf32>
    %34 = vector.broadcast %33 : vector<1x384xf32> to vector<16x384xf32>
    %35 = arith.addf %32, %34 : vector<16x384xf32>
    %36 = vector.extract_strided_slice %35 {offsets = [0, 0], sizes = [16, 128], strides = [1, 1]} : vector<16x384xf32> to vector<16x128xf32>
    %37 = arith.truncf %36 : vector<16x128xf32> to vector<16x128xbf16>
    %38 = vector.extract_strided_slice %35 {offsets = [0, 128], sizes = [16, 128], strides = [1, 1]} : vector<16x384xf32> to vector<16x128xf32>
    %39 = arith.truncf %38 : vector<16x128xf32> to vector<16x128xbf16>
    %40 = vector.extract_strided_slice %35 {offsets = [0, 256], sizes = [16, 128], strides = [1, 1]} : vector<16x384xf32> to vector<16x128xf32>
    %41 = arith.truncf %40 : vector<16x128xf32> to vector<16x128xbf16>
    %c0_17 = arith.constant 0 : index
    %c0_18 = arith.constant 0 : index
    %c0_19 = arith.constant 0 : index
    %42 = vector.load %arg2[%c0_17, %c0_18, %c0_19] : memref<1x1x16xf32, #tpu.memory_space<vmem>>, vector<1x1x16xf32>
    %43 = vector.shape_cast %42 : vector<1x1x16xf32> to vector<1x16xf32>
    %cst_20 = arith.constant 5.000000e-01 : f32
    %44 = vector.broadcast %cst_20 : f32 to vector<1x16xf32>
    %45 = arith.cmpf ogt, %43, %44 : vector<1x16xf32>
    %cst_21 = arith.constant 0.000000e+00 : f32
    %cst_22 = arith.constant -1.000000e+09 : f32
    %46 = vector.broadcast %cst_21 : f32 to vector<1x16xf32>
    %47 = vector.broadcast %cst_22 : f32 to vector<1x16xf32>
    %48 = arith.select %45, %46, %47 : vector<1x16xi1>, vector<1x16xf32>
    %49 = vector.shape_cast %48 : vector<1x16xf32> to vector<1x16xf32>
    %50 = vector.broadcast %49 : vector<1x16xf32> to vector<16x16xf32>
    %c0_23 = arith.constant 0 : index
    %c0_24 = arith.constant 0 : index
    %51 = vector.load %arg7[%c0_23, %c0_24] : memref<128x128xbf16, #tpu.memory_space<vmem>>, vector<128x128xbf16>
    %cst_25 = arith.constant 0.000000e+00 : f32
    %52 = vector.broadcast %cst_25 : f32 to vector<16x128xf32>
    %53 = vector.extract_strided_slice %37 {offsets = [0, 0], sizes = [16, 32], strides = [1, 1]} : vector<16x128xbf16> to vector<16x32xbf16>
    %54 = vector.extract_strided_slice %39 {offsets = [0, 0], sizes = [16, 32], strides = [1, 1]} : vector<16x128xbf16> to vector<16x32xbf16>
    %55 = vector.extract_strided_slice %41 {offsets = [0, 0], sizes = [16, 32], strides = [1, 1]} : vector<16x128xbf16> to vector<16x32xbf16>
    %cst_26 = arith.constant dense<0.000000e+00> : vector<16x16xf32>
    %56 = tpu.matmul %53, %54, %cst_26 {dimension_numbers = #tpu.dot_dimension_numbers<[1], [1], [0], [0], [0, 0, 1, 0], [], []>} : vector<16x32xbf16>, vector<16x32xbf16>, vector<16x16xf32> -> vector<16x16xf32>
    %cst_27 = arith.constant 0.176776692 : f32
    %57 = vector.broadcast %cst_27 : f32 to vector<16x16xf32>
    %58 = arith.mulf %56, %57 : vector<16x16xf32>
    %59 = arith.addf %58, %50 : vector<16x16xf32>
    %cst_28 = arith.constant dense<0xFF800000> : vector<16xf32>
    %60 = vector.multi_reduction <maximumf>, %59, %cst_28 [1] : vector<16x16xf32> to vector<16xf32>
    %61 = vector.shape_cast %60 : vector<16xf32> to vector<16x1xf32>
    %62 = vector.broadcast %61 : vector<16x1xf32> to vector<16x16xf32>
    %63 = arith.subf %59, %62 : vector<16x16xf32>
    %64 = math.exp %63 : vector<16x16xf32>
    %cst_29 = arith.constant dense<0.000000e+00> : vector<16xf32>
    %65 = vector.multi_reduction <add>, %64, %cst_29 [1] : vector<16x16xf32> to vector<16xf32>
    %66 = vector.shape_cast %65 : vector<16xf32> to vector<16x1xf32>
    %67 = tpu.reciprocal %66 {approx = true} : vector<16x1xf32> -> vector<16x1xf32>
    %68 = vector.broadcast %67 : vector<16x1xf32> to vector<16x16xf32>
    %69 = arith.mulf %64, %68 : vector<16x16xf32>
    %70 = arith.truncf %69 : vector<16x16xf32> to vector<16x16xbf16>
    %cst_30 = arith.constant dense<0.000000e+00> : vector<16x32xf32>
    %71 = tpu.matmul %70, %55, %cst_30 {dimension_numbers = #tpu.dot_dimension_numbers<[1], [0], [0], [1], [0, 0, 1, 1], [], []>} : vector<16x16xbf16>, vector<16x32xbf16>, vector<16x32xf32> -> vector<16x32xf32>
    %72 = arith.truncf %71 : vector<16x32xf32> to vector<16x32xbf16>
    %73 = vector.extract_strided_slice %51 {offsets = [0, 0], sizes = [32, 128], strides = [1, 1]} : vector<128x128xbf16> to vector<32x128xbf16>
    %cst_31 = arith.constant dense<0.000000e+00> : vector<16x128xf32>
    %74 = tpu.matmul %72, %73, %cst_31 {dimension_numbers = #tpu.dot_dimension_numbers<[1], [0], [0], [1], [0, 0, 1, 1], [], []>} : vector<16x32xbf16>, vector<32x128xbf16>, vector<16x128xf32> -> vector<16x128xf32>
    %75 = arith.addf %52, %74 : vector<16x128xf32>
    %76 = vector.extract_strided_slice %37 {offsets = [0, 32], sizes = [16, 32], strides = [1, 1]} : vector<16x128xbf16> to vector<16x32xbf16>
    %77 = vector.extract_strided_slice %39 {offsets = [0, 32], sizes = [16, 32], strides = [1, 1]} : vector<16x128xbf16> to vector<16x32xbf16>
    %78 = vector.extract_strided_slice %41 {offsets = [0, 32], sizes = [16, 32], strides = [1, 1]} : vector<16x128xbf16> to vector<16x32xbf16>
    %cst_32 = arith.constant dense<0.000000e+00> : vector<16x16xf32>
    %79 = tpu.matmul %76, %77, %cst_32 {dimension_numbers = #tpu.dot_dimension_numbers<[1], [1], [0], [0], [0, 0, 1, 0], [], []>} : vector<16x32xbf16>, vector<16x32xbf16>, vector<16x16xf32> -> vector<16x16xf32>
    %cst_33 = arith.constant 0.176776692 : f32
    %80 = vector.broadcast %cst_33 : f32 to vector<16x16xf32>
    %81 = arith.mulf %79, %80 : vector<16x16xf32>
    %82 = arith.addf %81, %50 : vector<16x16xf32>
    %cst_34 = arith.constant dense<0xFF800000> : vector<16xf32>
    %83 = vector.multi_reduction <maximumf>, %82, %cst_34 [1] : vector<16x16xf32> to vector<16xf32>
    %84 = vector.shape_cast %83 : vector<16xf32> to vector<16x1xf32>
    %85 = vector.broadcast %84 : vector<16x1xf32> to vector<16x16xf32>
    %86 = arith.subf %82, %85 : vector<16x16xf32>
    %87 = math.exp %86 : vector<16x16xf32>
    %cst_35 = arith.constant dense<0.000000e+00> : vector<16xf32>
    %88 = vector.multi_reduction <add>, %87, %cst_35 [1] : vector<16x16xf32> to vector<16xf32>
    %89 = vector.shape_cast %88 : vector<16xf32> to vector<16x1xf32>
    %90 = tpu.reciprocal %89 {approx = true} : vector<16x1xf32> -> vector<16x1xf32>
    %91 = vector.broadcast %90 : vector<16x1xf32> to vector<16x16xf32>
    %92 = arith.mulf %87, %91 : vector<16x16xf32>
    %93 = arith.truncf %92 : vector<16x16xf32> to vector<16x16xbf16>
    %cst_36 = arith.constant dense<0.000000e+00> : vector<16x32xf32>
    %94 = tpu.matmul %93, %78, %cst_36 {dimension_numbers = #tpu.dot_dimension_numbers<[1], [0], [0], [1], [0, 0, 1, 1], [], []>} : vector<16x16xbf16>, vector<16x32xbf16>, vector<16x32xf32> -> vector<16x32xf32>
    %95 = arith.truncf %94 : vector<16x32xf32> to vector<16x32xbf16>
    %96 = vector.extract_strided_slice %51 {offsets = [32, 0], sizes = [32, 128], strides = [1, 1]} : vector<128x128xbf16> to vector<32x128xbf16>
    %cst_37 = arith.constant dense<0.000000e+00> : vector<16x128xf32>
    %97 = tpu.matmul %95, %96, %cst_37 {dimension_numbers = #tpu.dot_dimension_numbers<[1], [0], [0], [1], [0, 0, 1, 1], [], []>} : vector<16x32xbf16>, vector<32x128xbf16>, vector<16x128xf32> -> vector<16x128xf32>
    %98 = arith.addf %75, %97 : vector<16x128xf32>
    %99 = vector.extract_strided_slice %37 {offsets = [0, 64], sizes = [16, 32], strides = [1, 1]} : vector<16x128xbf16> to vector<16x32xbf16>
    %100 = vector.extract_strided_slice %39 {offsets = [0, 64], sizes = [16, 32], strides = [1, 1]} : vector<16x128xbf16> to vector<16x32xbf16>
    %101 = vector.extract_strided_slice %41 {offsets = [0, 64], sizes = [16, 32], strides = [1, 1]} : vector<16x128xbf16> to vector<16x32xbf16>
    %cst_38 = arith.constant dense<0.000000e+00> : vector<16x16xf32>
    %102 = tpu.matmul %99, %100, %cst_38 {dimension_numbers = #tpu.dot_dimension_numbers<[1], [1], [0], [0], [0, 0, 1, 0], [], []>} : vector<16x32xbf16>, vector<16x32xbf16>, vector<16x16xf32> -> vector<16x16xf32>
    %cst_39 = arith.constant 0.176776692 : f32
    %103 = vector.broadcast %cst_39 : f32 to vector<16x16xf32>
    %104 = arith.mulf %102, %103 : vector<16x16xf32>
    %105 = arith.addf %104, %50 : vector<16x16xf32>
    %cst_40 = arith.constant dense<0xFF800000> : vector<16xf32>
    %106 = vector.multi_reduction <maximumf>, %105, %cst_40 [1] : vector<16x16xf32> to vector<16xf32>
    %107 = vector.shape_cast %106 : vector<16xf32> to vector<16x1xf32>
    %108 = vector.broadcast %107 : vector<16x1xf32> to vector<16x16xf32>
    %109 = arith.subf %105, %108 : vector<16x16xf32>
    %110 = math.exp %109 : vector<16x16xf32>
    %cst_41 = arith.constant dense<0.000000e+00> : vector<16xf32>
    %111 = vector.multi_reduction <add>, %110, %cst_41 [1] : vector<16x16xf32> to vector<16xf32>
    %112 = vector.shape_cast %111 : vector<16xf32> to vector<16x1xf32>
    %113 = tpu.reciprocal %112 {approx = true} : vector<16x1xf32> -> vector<16x1xf32>
    %114 = vector.broadcast %113 : vector<16x1xf32> to vector<16x16xf32>
    %115 = arith.mulf %110, %114 : vector<16x16xf32>
    %116 = arith.truncf %115 : vector<16x16xf32> to vector<16x16xbf16>
    %cst_42 = arith.constant dense<0.000000e+00> : vector<16x32xf32>
    %117 = tpu.matmul %116, %101, %cst_42 {dimension_numbers = #tpu.dot_dimension_numbers<[1], [0], [0], [1], [0, 0, 1, 1], [], []>} : vector<16x16xbf16>, vector<16x32xbf16>, vector<16x32xf32> -> vector<16x32xf32>
    %118 = arith.truncf %117 : vector<16x32xf32> to vector<16x32xbf16>
    %119 = vector.extract_strided_slice %51 {offsets = [64, 0], sizes = [32, 128], strides = [1, 1]} : vector<128x128xbf16> to vector<32x128xbf16>
    %cst_43 = arith.constant dense<0.000000e+00> : vector<16x128xf32>
    %120 = tpu.matmul %118, %119, %cst_43 {dimension_numbers = #tpu.dot_dimension_numbers<[1], [0], [0], [1], [0, 0, 1, 1], [], []>} : vector<16x32xbf16>, vector<32x128xbf16>, vector<16x128xf32> -> vector<16x128xf32>
    %121 = arith.addf %98, %120 : vector<16x128xf32>
    %122 = vector.extract_strided_slice %37 {offsets = [0, 96], sizes = [16, 32], strides = [1, 1]} : vector<16x128xbf16> to vector<16x32xbf16>
    %123 = vector.extract_strided_slice %39 {offsets = [0, 96], sizes = [16, 32], strides = [1, 1]} : vector<16x128xbf16> to vector<16x32xbf16>
    %124 = vector.extract_strided_slice %41 {offsets = [0, 96], sizes = [16, 32], strides = [1, 1]} : vector<16x128xbf16> to vector<16x32xbf16>
    %cst_44 = arith.constant dense<0.000000e+00> : vector<16x16xf32>
    %125 = tpu.matmul %122, %123, %cst_44 {dimension_numbers = #tpu.dot_dimension_numbers<[1], [1], [0], [0], [0, 0, 1, 0], [], []>} : vector<16x32xbf16>, vector<16x32xbf16>, vector<16x16xf32> -> vector<16x16xf32>
    %cst_45 = arith.constant 0.176776692 : f32
    %126 = vector.broadcast %cst_45 : f32 to vector<16x16xf32>
    %127 = arith.mulf %125, %126 : vector<16x16xf32>
    %128 = arith.addf %127, %50 : vector<16x16xf32>
    %cst_46 = arith.constant dense<0xFF800000> : vector<16xf32>
    %129 = vector.multi_reduction <maximumf>, %128, %cst_46 [1] : vector<16x16xf32> to vector<16xf32>
    %130 = vector.shape_cast %129 : vector<16xf32> to vector<16x1xf32>
    %131 = vector.broadcast %130 : vector<16x1xf32> to vector<16x16xf32>
    %132 = arith.subf %128, %131 : vector<16x16xf32>
    %133 = math.exp %132 : vector<16x16xf32>
    %cst_47 = arith.constant dense<0.000000e+00> : vector<16xf32>
    %134 = vector.multi_reduction <add>, %133, %cst_47 [1] : vector<16x16xf32> to vector<16xf32>
    %135 = vector.shape_cast %134 : vector<16xf32> to vector<16x1xf32>
    %136 = tpu.reciprocal %135 {approx = true} : vector<16x1xf32> -> vector<16x1xf32>
    %137 = vector.broadcast %136 : vector<16x1xf32> to vector<16x16xf32>
    %138 = arith.mulf %133, %137 : vector<16x16xf32>
    %139 = arith.truncf %138 : vector<16x16xf32> to vector<16x16xbf16>
    %cst_48 = arith.constant dense<0.000000e+00> : vector<16x32xf32>
    %140 = tpu.matmul %139, %124, %cst_48 {dimension_numbers = #tpu.dot_dimension_numbers<[1], [0], [0], [1], [0, 0, 1, 1], [], []>} : vector<16x16xbf16>, vector<16x32xbf16>, vector<16x32xf32> -> vector<16x32xf32>
    %141 = arith.truncf %140 : vector<16x32xf32> to vector<16x32xbf16>
    %142 = vector.extract_strided_slice %51 {offsets = [96, 0], sizes = [32, 128], strides = [1, 1]} : vector<128x128xbf16> to vector<32x128xbf16>
    %cst_49 = arith.constant dense<0.000000e+00> : vector<16x128xf32>
    %143 = tpu.matmul %141, %142, %cst_49 {dimension_numbers = #tpu.dot_dimension_numbers<[1], [0], [0], [1], [0, 0, 1, 1], [], []>} : vector<16x32xbf16>, vector<32x128xbf16>, vector<16x128xf32> -> vector<16x128xf32>
    %144 = arith.addf %121, %143 : vector<16x128xf32>
    %145 = arith.addf %1, %144 : vector<16x128xf32>
    %c0_50 = arith.constant 0 : index
    %c0_51 = arith.constant 0 : index
    %146 = vector.load %arg8[%c0_50, %c0_51] : memref<1x128xf32, #tpu.memory_space<vmem>>, vector<1x128xf32>
    %147 = vector.broadcast %146 : vector<1x128xf32> to vector<16x128xf32>
    %148 = arith.addf %145, %147 : vector<16x128xf32>
    %c0_52 = arith.constant 0 : index
    %c0_53 = arith.constant 0 : index
    %149 = vector.load %arg9[%c0_52, %c0_53] : memref<1x128xf32, #tpu.memory_space<vmem>>, vector<1x128xf32>
    %c0_54 = arith.constant 0 : index
    %c0_55 = arith.constant 0 : index
    %150 = vector.load %arg10[%c0_54, %c0_55] : memref<1x128xf32, #tpu.memory_space<vmem>>, vector<1x128xf32>
    %cst_56 = arith.constant dense<0.000000e+00> : vector<16xf32>
    %151 = vector.multi_reduction <add>, %148, %cst_56 [1] : vector<16x128xf32> to vector<16xf32>
    %152 = vector.shape_cast %151 : vector<16xf32> to vector<16x1xf32>
    %cst_57 = arith.constant 1.280000e+02 : f32
    %153 = vector.broadcast %cst_57 : f32 to vector<16x1xf32>
    %154 = arith.divf %152, %153 : vector<16x1xf32>
    %155 = arith.mulf %148, %148 : vector<16x128xf32>
    %cst_58 = arith.constant dense<0.000000e+00> : vector<16xf32>
    %156 = vector.multi_reduction <add>, %155, %cst_58 [1] : vector<16x128xf32> to vector<16xf32>
    %157 = vector.shape_cast %156 : vector<16xf32> to vector<16x1xf32>
    %cst_59 = arith.constant 1.280000e+02 : f32
    %158 = vector.broadcast %cst_59 : f32 to vector<16x1xf32>
    %159 = arith.divf %157, %158 : vector<16x1xf32>
    %160 = arith.mulf %154, %154 : vector<16x1xf32>
    %161 = arith.subf %159, %160 : vector<16x1xf32>
    %cst_60 = arith.constant 0.000000e+00 : f32
    %162 = vector.broadcast %cst_60 : f32 to vector<16x1xf32>
    %163 = arith.maximumf %161, %162 : vector<16x1xf32>
    %cst_61 = arith.constant 1.00787401 : f32
    %164 = vector.broadcast %cst_61 : f32 to vector<16x1xf32>
    %165 = arith.mulf %163, %164 : vector<16x1xf32>
    %166 = math.sqrt %165 : vector<16x1xf32>
    %167 = vector.broadcast %154 : vector<16x1xf32> to vector<16x128xf32>
    %168 = arith.subf %148, %167 : vector<16x128xf32>
    %169 = vector.broadcast %149 : vector<1x128xf32> to vector<16x128xf32>
    %170 = arith.mulf %169, %168 : vector<16x128xf32>
    %cst_62 = arith.constant 9.99999997E-7 : f32
    %171 = vector.broadcast %cst_62 : f32 to vector<16x1xf32>
    %172 = arith.addf %166, %171 : vector<16x1xf32>
    %173 = vector.broadcast %172 : vector<16x1xf32> to vector<16x128xf32>
    %174 = arith.divf %170, %173 : vector<16x128xf32>
    %175 = vector.broadcast %150 : vector<1x128xf32> to vector<16x128xf32>
    %176 = arith.addf %174, %175 : vector<16x128xf32>
    %177 = arith.truncf %176 : vector<16x128xf32> to vector<16x128xbf16>
    %c0_63 = arith.constant 0 : index
    %c0_64 = arith.constant 0 : index
    %178 = vector.load %arg11[%c0_63, %c0_64] : memref<128x512xbf16, #tpu.memory_space<vmem>>, vector<128x512xbf16>
    %cst_65 = arith.constant dense<0.000000e+00> : vector<16x512xf32>
    %179 = tpu.matmul %177, %178, %cst_65 {dimension_numbers = #tpu.dot_dimension_numbers<[1], [0], [0], [1], [0, 0, 1, 1], [], []>} : vector<16x128xbf16>, vector<128x512xbf16>, vector<16x512xf32> -> vector<16x512xf32>
    %c0_66 = arith.constant 0 : index
    %c0_67 = arith.constant 0 : index
    %180 = vector.load %arg12[%c0_66, %c0_67] : memref<1x512xf32, #tpu.memory_space<vmem>>, vector<1x512xf32>
    %181 = vector.broadcast %180 : vector<1x512xf32> to vector<16x512xf32>
    %182 = arith.addf %179, %181 : vector<16x512xf32>
    %cst_68 = arith.constant 0.000000e+00 : f32
    %183 = vector.broadcast %cst_68 : f32 to vector<16x512xf32>
    %184 = arith.maximumf %182, %183 : vector<16x512xf32>
    %185 = arith.truncf %184 : vector<16x512xf32> to vector<16x512xbf16>
    %c0_69 = arith.constant 0 : index
    %c0_70 = arith.constant 0 : index
    %186 = vector.load %arg13[%c0_69, %c0_70] : memref<512x128xbf16, #tpu.memory_space<vmem>>, vector<512x128xbf16>
    %cst_71 = arith.constant dense<0.000000e+00> : vector<16x128xf32>
    %187 = tpu.matmul %185, %186, %cst_71 {dimension_numbers = #tpu.dot_dimension_numbers<[1], [0], [0], [1], [0, 0, 1, 1], [], []>} : vector<16x512xbf16>, vector<512x128xbf16>, vector<16x128xf32> -> vector<16x128xf32>
    %c0_72 = arith.constant 0 : index
    %c0_73 = arith.constant 0 : index
    %188 = vector.load %arg14[%c0_72, %c0_73] : memref<1x128xf32, #tpu.memory_space<vmem>>, vector<1x128xf32>
    %189 = vector.broadcast %188 : vector<1x128xf32> to vector<16x128xf32>
    %190 = arith.addf %187, %189 : vector<16x128xf32>
    %191 = arith.addf %148, %190 : vector<16x128xf32>
    %c0_74 = arith.constant 0 : index
    %c0_75 = arith.constant 0 : index
    %c0_76 = arith.constant 0 : index
    %192 = vector.load %arg15[%c0_74, %c0_75, %c0_76] : memref<1x16x128xf32, #tpu.memory_space<vmem>>, vector<1x16x128xf32>
    %193 = vector.shape_cast %192 : vector<1x16x128xf32> to vector<16x128xf32>
    %194 = vector.shape_cast %191 : vector<16x128xf32> to vector<1x16x128xf32>
    tpu.vector_store %arg15[%c0_74, %c0_75, %c0_76], %194 {strides = array<i32>} : memref<1x16x128xf32, #tpu.memory_space<vmem>>, vector<1x16x128xf32>,
    return
  }
  func.func @transform_0(%arg0: i32) -> (i32, i32, i32) {
    %c0_i32 = arith.constant 0 : i32
    %c0_i32_0 = arith.constant 0 : i32
    %c0_i32_1 = arith.constant 0 : i32
    return %arg0, %c0_i32, %c0_i32_0 : i32, i32, i32
  }
  func.func @transform_1(%arg0: i32) -> (i32, i32, i32) {
    %c0_i32 = arith.constant 0 : i32
    %c0_i32_0 = arith.constant 0 : i32
    %c0_i32_1 = arith.constant 0 : i32
    return %arg0, %c0_i32, %c0_i32_0 : i32, i32, i32
  }
  func.func @transform_2(%arg0: i32) -> (i32, i32) {
    %c0_i32 = arith.constant 0 : i32
    %c0_i32_0 = arith.constant 0 : i32
    %c0_i32_1 = arith.constant 0 : i32
    return %c0_i32, %c0_i32_0 : i32, i32
  }
  func.func @transform_3(%arg0: i32) -> (i32, i32) {
    %c0_i32 = arith.constant 0 : i32
    %c0_i32_0 = arith.constant 0 : i32
    %c0_i32_1 = arith.constant 0 : i32
    return %c0_i32, %c0_i32_0 : i32, i32
  }
  func.func @transform_4(%arg0: i32) -> (i32, i32) {
    %c0_i32 = arith.constant 0 : i32
    %c0_i32_0 = arith.constant 0 : i32
    %c0_i32_1 = arith.constant 0 : i32
    return %c0_i32, %c0_i32_0 : i32, i32
  }
  func.func @transform_5(%arg0: i32) -> (i32, i32) {
    %c0_i32 = arith.constant 0 : i32
    %c0_i32_0 = arith.constant 0 : i32
    %c0_i32_1 = arith.constant 0 : i32
    return %c0_i32, %c0_i32_0 : i32, i32
  }
  func.func @transform_6(%arg0: i32) -> (i32, i32) {
    %c0_i32 = arith.constant 0 : i32
    %c0_i32_0 = arith.constant 0 : i32
    %c0_i32_1 = arith.constant 0 : i32
    return %c0_i32, %c0_i32_0 : i32, i32
  }
  func.func @transform_7(%arg0: i32) -> (i32, i32) {
    %c0_i32 = arith.constant 0 : i32
    %c0_i32_0 = arith.constant 0 : i32
    %c0_i32_1 = arith.constant 0 : i32
    return %c0_i32, %c0_i32_0 : i32, i32
  }
  func.func @transform_8(%arg0: i32) -> (i32, i32) {
    %c0_i32 = arith.constant 0 : i32
    %c0_i32_0 = arith.constant 0 : i32
    %c0_i32_1 = arith.constant 0 : i32
    return %c0_i32, %c0_i32_0 : i32, i32
  }
  func.func @transform_9(%arg0: i32) -> (i32, i32) {
    %c0_i32 = arith.constant 0 : i32
    %c0_i32_0 = arith.constant 0 : i32
    %c0_i32_1 = arith.constant 0 : i32
    return %c0_i32, %c0_i32_0 : i32, i32
  }
  func.func @transform_10(%arg0: i32) -> (i32, i32) {
    %c0_i32 = arith.constant 0 : i32
    %c0_i32_0 = arith.constant 0 : i32
    %c0_i32_1 = arith.constant 0 : i32
    return %c0_i32, %c0_i32_0 : i32, i32
  }
  func.func @transform_11(%arg0: i32) -> (i32, i32) {
    %c0_i32 = arith.constant 0 : i32
    %c0_i32_0 = arith.constant 0 : i32
    %c0_i32_1 = arith.constant 0 : i32
    return %c0_i32, %c0_i32_0 : i32, i32
  }
  func.func @transform_12(%arg0: i32) -> (i32, i32) {
    %c0_i32 = arith.constant 0 : i32
    %c0_i32_0 = arith.constant 0 : i32
    %c0_i32_1 = arith.constant 0 : i32
    return %c0_i32, %c0_i32_0 : i32, i32
  }
  func.func @transform_13(%arg0: i32) -> (i32, i32) {
    %c0_i32 = arith.constant 0 : i32
    %c0_i32_0 = arith.constant 0 : i32
    %c0_i32_1 = arith.constant 0 : i32
    return %c0_i32, %c0_i32_0 : i32, i32
  }
  func.func @transform_14(%arg0: i32) -> (i32, i32, i32) {
    %c0_i32 = arith.constant 0 : i32
    %c0_i32_0 = arith.constant 0 : i32
    %c0_i32_1 = arith.constant 0 : i32
    return %arg0, %c0_i32, %c0_i32_0 : i32, i32, i32
  }
}

</mosaic_0001>

<bundles_post_ra>
// kernel: encoder_layer_forward.1
= control target key start
LH: loop header
LB: loop body
LE: loop exit
PB: predicated region body
PF: predicated region fallthrough
CT: control target
= control target key end

     0   :  { %s3663_s0 = inlined_call_operand.vmem [shape: f32[2,16,128], index: 0, kind: input, shape index: {}]   ;;  %s3664_s1 = inlined_call_operand.vmem [shape: f32[2,1,16], index: 1, kind: input, shape index: {}]   ;;  %s3665_s2 = inlined_call_operand.vmem [shape: f32[1,128], index: 2, kind: input, shape index: {}]   ;;  %s3666_s3 = inlined_call_operand.vmem [shape: f32[1,128], index: 3, kind: input, shape index: {}]   ;;  %s3667_s4 = inlined_call_operand.vmem [shape: bf16[128,384], index: 4, kind: input, shape index: {}]   ;;  %s3668_s5 = inlined_call_operand.vmem [shape: f32[1,384], index: 5, kind: input, shape index: {}]   ;;  %s3669_s6 = inlined_call_operand.vmem [shape: bf16[128,128], index: 6, kind: input, shape index: {}]   ;;  %s3670_s7 = inlined_call_operand.vmem [shape: f32[1,128], index: 7, kind: input, shape index: {}]   ;;  %s3671_s8 = inlined_call_operand.vmem [shape: f32[1,128], index: 8, kind: input, shape index: {}]   ;;  %s3672_s9 = inlined_call_operand.vmem [shape: f32[1,128], index: 9, kind: input, shape index: {}]   ;;  %s3673_s10 = inlined_call_operand.vmem [shape: bf16[128,512], index: 10, kind: input, shape index: {}]   ;;  %s3674_s11 = inlined_call_operand.vmem [shape: f32[1,512], index: 11, kind: input, shape index: {}]   ;;  %s3675_s12 = inlined_call_operand.vmem [shape: bf16[512,128], index: 12, kind: input, shape index: {}]   ;;  %s3676_s13 = inlined_call_operand.vmem [shape: f32[1,128], index: 13, kind: input, shape index: {}]   ;;  %s3677_s14 = inlined_call_operand.hbm [shape: f32[2,16,128], index: 14, kind: output, shape index: {}]  }
   0x1   :  { %3682 = sst [smem:[#allocation9_spill]] %s3663_s0 }
   0x2   :  { %19 = vsyncpa [#allocation3], 0 }
   0x3   :  { %21 = vsyncpa [#allocation3 + $0x1], 0  ;;  %s3062_s29 = smov 0   ;;  %s3064_s30 = smov 0  }
   0x4   :  { %s3066_s15 = smov 0   ;;  %s3068_s16 = smov 0  }
   0x5 LB: > { %3683 = sst [smem:[#allocation5_spill]] %s2971_s15  ;;  %s3083_s17 = sadd.s32 4294967295, %s2975_s16   ;;  %s2975_s16 = sphi %s3068_s16, %s3691_s16   ;;  %s2971_s15 = sphi %s3066_s15, %s3693_s15   ;;  %s2967_s30 = sphi %s3064_s30, %s3695_s30   ;;  %s2963_s29 = sphi %s3062_s29, %s3694_s29  }
   0x6   : > { %s2386_s18 = sadd.s32 4294967294, %s2975_s16   ;;  %s3087_s19 = sadd.s32 1, %s2975_s16  }
   0x7   : > { %3684 = sst [smem:[#allocation6_spill]] %s3087_s19  ;;  %s338_s20 = sadd.s32 1, %s2971_s15 }
   0x8   : > { %s335_s21 = ssub.s32 %s2975_s16, %s3087_s19  ;;  %p348_p0 = scmp.ne.s32.totalorder %s2971_s15, %s2967_s30 }
   0x9   : > { %p336_p1 = scmp.eq.s32.totalorder %s335_s21, 0  ;;  %p349_p2 = scmp.eq.s32.totalorder %s3083_s17, 1 }
   0xa   : > { %p354_p3 = scmp.ne.s32.totalorder %s2967_s30, %s2963_s29  ;;  %p355_p4 = scmp.eq.s32.totalorder %s2386_s18, 1 }
   0xb   : > { %s3098_s22 = scalar_select %p336_p1, %s2971_s15, %s338_s20  }
   0xc   : > { %p3100_p5 = por %p349_p2, %p348_p0  ;;  %p3104_p6 = por %p355_p4, %p354_p3 }
   0xd   : > { %3685 = sst [smem:[#allocation7_spill]] %s3098_s22  ;;  %p2389_p7 = scmp.ge.s32.totalorder %s2975_s16, 1 }
   0xe   : > { %s3687_s24 = scalar_select %p3104_p6, 1, 0 }
   0xf   : > { %p423_p8 = scmp.lt.s32.totalorder %s2975_s16, 3 }
  0x10   : > { %3688 = sst [smem:[#allocation8_spill]] %s3687_s24 }
  0x11   : > { %p424_p9 = pnand %p2389_p7, %p423_p8 }
  0x12   : > { %p472_p10 = scmp.lt.s32.totalorder (!%p424_p9), %s3083_s17, 1  ;;  %s3689_s0 = sld [smem:[#allocation9_spill]] (!%p424_p9)  ;;  %v2743_v4 = vld [vmem:[%s3667_s4 + $0x4] ss:$12 sps:$4 sm:$0xff] (!%p424_p9)   ;;  %v2745_v5 = vld [vmem:[%s3667_s4] ss:$12 sps:$4 sm:$0xff] (!%p424_p9)  }
  0x13   : > { %427 = sbr.rel (%p424_p9) target bundleno = 3489 (0xda1), region = 76  ;;  %v2746_v6 = vld [vmem:[%s3667_s4 + $0x8] ss:$12 sps:$4 sm:$0xff] (!%p424_p9)   ;;  %724 = vmatprep.subr.bf16.mxu0 (!%p424_p9), %v2743_v4  ;;  %v2977_v7 = vmov (!%p424_p9), 0.0   ;;  %v2749_v9 = vld [vmem:[%s3667_s4 + $0x18] ss:$12 sps:$4 sm:$0xff] (!%p424_p9)  }
  0x14   : > { %2595 = vmatprep.subr.bf16.mxu1 (!%p424_p9), %v2977_v7  ;;  %725 = vmatpush1.bf16.msra.mxu0 (!%p424_p9), %v2745_v5  ;;  %v2747_v8 = vld [vmem:[%s3667_s4 + $0x1c] ss:$12 sps:$4 sm:$0xff] (!%p424_p9)   ;;  %v2750_v10 = vld [vmem:[%s3667_s4 + $0x20] ss:$12 sps:$4 sm:$0xff] (!%p424_p9)   ;;  %v2754_v13 = vld [vmem:[%s3667_s4 + $0x38] ss:$12 sps:$4 sm:$0xff] (!%p424_p9)  }
  0x15   : > { %2596 = vmatpush3.bf16.msra.mxu1 (!%p424_p9), %v2746_v6  ;;  %726 = vmatprep.subr.bf16.mxu0 (!%p424_p9), %v2747_v8  ;;  %v2751_v11 = vld [vmem:[%s3667_s4 + $0x34] ss:$12 sps:$4 sm:$0xff] (!%p424_p9)   ;;  %v2753_v12 = vld [vmem:[%s3667_s4 + $0x30] ss:$12 sps:$4 sm:$0xff] (!%p424_p9)   ;;  %v2755_v14 = vld [vmem:[%s3667_s4 + $0x4c] ss:$12 sps:$4 sm:$0xff] (!%p424_p9)  }
  0x16   : > { %2597 = vmatprep.subr.bf16.mxu1 (!%p424_p9), %v2977_v7  ;;  %v2757_v15 = vld [vmem:[%s3667_s4 + $0x48] ss:$12 sps:$4 sm:$0xff] (!%p424_p9)   ;;  %v2758_v16 = vld [vmem:[%s3667_s4 + $0x50] ss:$12 sps:$4 sm:$0xff] (!%p424_p9)   ;;  %v2761_v18 = vld [vmem:[%s3667_s4 + $0x60] ss:$12 sps:$4 sm:$0xff] (!%p424_p9)  }
  0x17   : > { %v2759_v17 = vld [vmem:[%s3667_s4 + $0x64] ss:$12 sps:$4 sm:$0xff] (!%p424_p9)   ;;  %v2762_v19 = vld [vmem:[%s3667_s4 + $0x68] ss:$12 sps:$4 sm:$0xff] (!%p424_p9)   ;;  %v2766_v22 = vld [vmem:[%s3667_s4 + $0x80] ss:$12 sps:$4 sm:$0xff] (!%p424_p9)  }
  0x18   : > { %727 = vmatpush1.bf16.msra.mxu0 (!%p424_p9), %v2749_v9  ;;  %v2763_v20 = vld [vmem:[%s3667_s4 + $0x7c] ss:$12 sps:$4 sm:$0xff] (!%p424_p9)   ;;  %v2765_v21 = vld [vmem:[%s3667_s4 + $0x78] ss:$12 sps:$4 sm:$0xff] (!%p424_p9)   ;;  %v2767_v23 = vld [vmem:[%s3667_s4 + $0x94] ss:$12 sps:$4 sm:$0xff] (!%p424_p9)  }
  0x19   : > { %2598 = vmatpush3.bf16.msra.mxu1 (!%p424_p9), %v2750_v10  ;;  %728 = vmatprep.subr.bf16.mxu0 (!%p424_p9), %v2751_v11  ;;  %v2978_v24 = vmov (!%p424_p9), 0   ;;  %vm2979_vm0 = vmmov (!%p424_p9), 0   ;;  %v2769_v25 = vld [vmem:[%s3667_s4 + $0x90] ss:$12 sps:$4 sm:$0xff] (!%p424_p9)   ;;  %v2770_v26 = vld [vmem:[%s3667_s4 + $0x98] ss:$12 sps:$4 sm:$0xff] (!%p424_p9)  }
  0x1a   : > { %s3112_s25 = scalar_select %p472_p10, %s3083_s17, 1  ;;  %2599 = vmatprep.subr.bf16.mxu1 %v2977_v7  ;;  %756 = vmatprep.mubr.bf16.mxu0 %v2978_v24  ;;  %v2771_v27 = vld [vmem:[%s3667_s4 + $0xac] ss:$12 sps:$4 sm:$0xff]   ;;  %v2773_v28 = vld [vmem:[%s3667_s4 + $0xa8] ss:$12 sps:$4 sm:$0xff]   ;;  %vm836_vm5 = vcmask 261120  }
  0x1b   : > { %2611 = vmatprep.mubr.msk.bf16.mxu1 %vm2979_vm0, %v2977_v7  ;;  %v2774_v29 = vld [vmem:[%s3667_s4 + $0xb0] ss:$12 sps:$4 sm:$0xff]   ;;  %v2393_v59 = vld [vmem:[%s3665_s2] ss:$0 sm:$0xff]  ;;  %s2980_s22 = smov 96   ;;  %vm888_vm7 = vcmask 130048  }
  0x1c   : > { %s2512_s26 = sshll.u32 %s3112_s25, 4  ;;  %729 = vmatpush1.bf16.msra.mxu0 %v2753_v12  ;;  %v2394_v4 = vld [vmem:[%s3666_s3] ss:$0 sm:$0xff]  ;;  %s479_s21 = scalar_lea.vmem %s3664_s1, %s3112_s25 }
  0x1d   : > { %s3118_s18 = scalar_lea.vmem %s3689_s0, %s2512_s26  ;;  %2600 = vmatpush3.bf16.msra.mxu1 %v2754_v13  ;;  %730 = vmatprep.subr.bf16.mxu0 %v2755_v14  ;;  %v579_v12 = vld [vmem:[%s3668_s5] sm:$0x7]  ;;  %s2982_s25 = smov 64  }
  0x1e   : > { %v3121_v0 = vld [vmem:[%s3118_s18] sm:$0xff]  ;;  %v3124_v1 = vld [vmem:[%s3118_s18 + $0x8] sm:$0xff]  ;;  %2601 = vmatprep.subr.bf16.mxu1 %v2977_v7  ;;  %s2983_s20 = smov 32   ;;  %s2513_s28 = sshll.u32 %s3083_s17, 8 }
  0x1f   : > { %485 = vadd.xlane.f32.xlu0 %v3121_v0  ;;  %v492_v2 = vmul.f32 %v3121_v0, %v3121_v0  ;;  %v493_v3 = vmul.f32 %v3124_v1, %v3124_v1  ;;  %s3619_s19 = scalar_lea.hbm %s3677_s14, %s2513_s28 }
  0x20   : > { %731 = vmatpush1.bf16.msra.mxu0 %v2757_v15 }
  0x21   : > { %494 = vadd.xlane.f32.xlu1 %v492_v2  ;;  %2602 = vmatpush3.bf16.msra.mxu1 %v2758_v16 }
  0x22   : > { %732 = vmatprep.subr.bf16.mxu0 %v2759_v17  ;;  %2603 = vmatprep.subr.bf16.mxu1 %v2977_v7 }
  0x23   : > { %487 = vadd.xlane.f32.xlu0 %v3124_v1 }
  0x24   : > { %733 = vmatpush1.bf16.msra.mxu0 %v2761_v18 }
  0x25   : > { %496 = vadd.xlane.f32.xlu1 %v493_v3  ;;  %2604 = vmatpush3.bf16.msra.mxu1 %v2762_v19 }
  0x26   : > { %734 = vmatprep.subr.bf16.mxu0 %v2763_v20  ;;  %2605 = vmatprep.subr.bf16.mxu1 %v2977_v7 }
  0x28   : > { %735 = vmatpush1.bf16.msra.mxu0 %v2765_v21 }
  0x29   : > { %2606 = vmatpush3.bf16.msra.mxu1 %v2766_v22  ;;  %736 = vmatprep.subr.bf16.mxu0 %v2767_v23 }
  0x2a   : > { %2607 = vmatprep.subr.bf16.mxu1 %v2977_v7 }
  0x2c   : > { %737 = vmatpush1.bf16.msra.mxu0 %v2769_v25 }
  0x2d   : > { %2608 = vmatpush3.bf16.msra.mxu1 %v2770_v26  ;;  %738 = vmatprep.subr.bf16.mxu0 %v2771_v27 }
  0x2e   : > { %2609 = vmatprep.subr.bf16.mxu1 %v2977_v7 }
  0x30   : > { %739 = vmatpush1.bf16.msra.mxu0 %v2773_v28 }
  0x31   : > { %2610 = vmatpush3.bf16.msra.mxu1 %v2774_v29  ;;  %2615 = vmatprep.subr.bf16.mxu0 %v2977_v7 }
  0x32   : > { %2621 = vmatprep.subr.bf16.mxu1 %v2977_v7 }
  0xac   : > { %v486_v30 = vpop.xlane.xlu0 %485 }
  0xad   : > { %v490_v31 = vmul.f32 0.0078125, %v486_v30 }
  0xae   : > { %v495_v32 = vpop.xlane.xlu1 %494 }
  0xaf   : > { %v500_v33 = vmul.f32 %v490_v31, %v490_v31  ;;  %v498_v34 = vmul.f32 0.0078125, %v495_v32  ;;  %v522_v58 = vsub.f32 %v3121_v0, %v490_v31  ;;  %v581_v0 = vlaneseq }
  0xb0   : > { %v488_v35 = vpop.xlane.xlu0 %487 }
  0xb1   : > { %v502_v36 = vsub.f32 %v498_v34, %v500_v33  ;;  %v491_v37 = vmul.f32 0.0078125, %v488_v35  ;;  %v530_v62 = vmul.f32 %v2393_v59, %v522_v58 }
  0xb2   : > { %v497_v38 = vpop.xlane.xlu1 %496 }
  0xb3   : > { %v504_v39 = vmax.f32 %v502_v36, 0.0  ;;  %v501_v40 = vmul.f32 %v491_v37, %v491_v37  ;;  %v499_v41 = vmul.f32 0.0078125, %v497_v38  ;;  %v523_v60 = vsub.f32 %v3124_v1, %v491_v37 }
  0xb4   : > { %v3229_v1 = vshrl.u32 %v581_v0, 7 }
  0xb5   : > { %v506_v42 = vmul.f32 1.007874, %v504_v39  ;;  %v503_v43 = vsub.f32 %v499_v41, %v501_v40  ;;  %v531_v63 = vmul.f32 %v2393_v59, %v523_v60  ;;  %v811_v39 = vld [vmem:[%s479_s21] sm:$0x1]  ;;  %v2981_v40 = vmov -1e+09  }
  0xb6   : > { %v3232_v10 = vsub.s32 0, %v3229_v1  ;;  %v591_v11 = vsub.s32 2, %v3229_v1  ;;  %v587_v13 = vsub.s32 1, %v3229_v1  ;;  %vm812_vm6 = vcmp.gt.f32.partialorder %v811_v39, 0.5  ;;  %s2984_s21 = smov [#allocation2]  }
  0xb7   : > { %2863 = vrsqrt.f32 %v506_v42  ;;  %v505_v44 = vmax.f32 %v503_v43, 0.0  ;;  %vm510_vm1 = vcmp.eq.f32.partialorder %v506_v42, inf  ;;  %v513_v48 = vand.u32 2147483648, %v506_v42 }
  0xb8   : > { %vm512_vm2 = vcmp.eq.f32.partialorder %v506_v42, 0.0  ;;  %v584_v14 = vrot.slane %v579_v12, %v3232_v10  ;;  %v592_v15 = vrot.slane %v579_v12, %v591_v11  ;;  %v588_v18 = vrot.slane %v579_v12, %v587_v13 }
  0xb9   : > { %v507_v45 = vmul.f32 1.007874, %v505_v44  ;;  %v813_v41 = vsel %vm812_vm6, 0.0, %v2981_v40 }
  0xbb   : > { %2865 = vrsqrt.f32 %v507_v45  ;;  %vm517_vm3 = vcmp.eq.f32.partialorder %v507_v45, inf  ;;  %v520_v54 = vand.u32 2147483648, %v507_v45  ;;  %vm519_vm4 = vcmp.eq.f32.partialorder %v507_v45, 0.0 }
  0xc1   : > { %v2864_v46 = vpop.eup %2863 }
  0xc2   : > { %v509_v47 = vmul.f32 %v2864_v46, %v506_v42 }
  0xc4   : > { %v511_v49 = vsel %vm510_vm1, %v506_v42, %v509_v47  ;;  %v3273_v42 = vrot.slane %v813_v41, %v3232_v10 }
  0xc5   : > { %v514_v50 = vsel %vm512_vm2, %v513_v48, %v511_v49  ;;  %v2866_v51 = vpop.eup %2865 }
  0xc6   : > { %v532_v52 = vadd.f32 1e-06, %v514_v50  ;;  %v516_v53 = vmul.f32 %v2866_v51, %v507_v45 }
  0xc8   : > { %v518_v55 = vsel %vm517_vm3, %v507_v45, %v516_v53  ;;  %2867 = vrcp.f32 %v532_v52 }
  0xc9   : > { %v521_v56 = vsel %vm519_vm4, %v520_v54, %v518_v55 }
  0xca   : > { %v533_v57 = vadd.f32 1e-06, %v521_v56 }
  0xcc   : > { %2869 = vrcp.f32 %v533_v57 }
  0xd2   : > { %v2868_v61 = vpop.eup %2867 }
  0xd3   : > { %v535_v2 = vmul.f32 %v2868_v61, %v530_v62 }
  0xd5   : > { %v544_v6 = vadd.f32 %v2394_v4, %v535_v2 }
  0xd6   : > { %v2870_v3 = vpop.eup %2869 }
  0xd7   : > { %v537_v5 = vmul.f32 %v2870_v3, %v531_v63 }
  0xd9   : > { %v545_v8 = vadd.f32 %v2394_v4, %v537_v5 }
  0xdb   : > { %v546_v9 = vpack.c.bf16 %v545_v8, %v544_v6 }
  0xdd   : > { %757 = vmatmul.mubr.bf16.vlgmr.msra.gmra.mrb[0].mxu0 %v546_v9  ;;  %2612 = vmatmul.mubr.bf16.vlgmr.msra.gmra.mrb[0].mxu1 %v546_v9 }
  0xde   : > { %2617 = vmatprep.mubr.msk.bf16.mxu0 %vm2979_vm0, %v2977_v7  ;;  %2623 = vmatprep.mubr.msk.bf16.mxu1 %vm2979_vm0, %v2977_v7 }
 0x1b0   : > { %v758_v16 = vpop.f32.mrb[0].mxu0  ;;  %v801_v17 = vpop.f32.mrb[0].mxu1 }
 0x1b1   : > { %v760_v19 = vpop.f32.mrb[1].mxu0  ;;  %v2613_v20 = vpop.f32.mrb[1].mxu1  ;;  %v759_v23 = vadd.f32 %v758_v16, %v584_v14  ;;  %v802_v25 = vadd.f32 %v801_v17, %v592_v15 }
 0x1b2   : > { %v762_v21 = vpop.f32.mrb[2].mxu0  ;;  %v804_v22 = vpop.f32.mrb[2].mxu1  ;;  %v761_v30 = vadd.f32 %v760_v19, %v588_v18 }
 0x1b3   : > { %v763_v26 = vadd.f32 %v762_v21, %v584_v14  ;;  %v805_v27 = vadd.f32 %v804_v22, %v592_v15  ;;  %v764_v28 = vpop.f32.mrb[3].mxu0  ;;  %v2614_v29 = vpop.f32.mrb[3].mxu1 }
 0x1b4   : > { %v765_v31 = vadd.f32 %v764_v28, %v588_v18 }
 0x1b5   : > { %v3244_v32 = vpack.c.bf16 %v763_v26, %v759_v23  ;;  %v3246_v33 = vpack.c.bf16 %v805_v27, %v802_v25 }
 0x1b6   : > { %v3248_v34 = vpack.c.bf16 %v765_v31, %v761_v30 }
 0x1b7   : > { %2622 = vmatpush3.bf16.msra.mxu1 %v3246_v33  ;;  %958 = vrot.lane.b32.xlu1 %v3244_v32, %s2980_s22 }
 0x1b8   : > { %961 = vrot.lane.b32.xlu0 %v3248_v34, %s2980_s22  ;;  %v841_v35 = vsel %vm836_vm5, %v3248_v34, 0  ;;  %2633 = vmatprep.subr.bf16.mxu1 %v2977_v7 }
 0x1b9   : > { %2616 = vmatpush3.bf16.xpose.msra.mxu0 %v841_v35  ;;  %v2777_v35 = vld [vmem:[%s3669_s6 + $0x10] sm:$0xff]  }
 0x1ba   : > { %2627 = vmatprep.subr.bf16.mxu0 %v2977_v7 }
 0x1c0   : > { %2618 = vmatmul.mubr.msk.bf16.vlgmr.msra.gmra.mrb[4].mxu0 %vm836_vm5, %v3244_v32 }
 0x1c1   : > { %2629 = vmatprep.mubr.msk.bf16.mxu0 %vm2979_vm0, %v2977_v7 }
 0x229   : > { %v959_v38 = vpop.permute.xlu1 %958 }
 0x22a   : > { %v962_v36 = vpop.permute.xlu0 %961 }
 0x22b   : > { %v967_v37 = vsel %vm836_vm5, %v962_v36, 0  ;;  %v2778_v36 = vld [vmem:[%s3669_s6 + $0x18] sm:$0xff]  }
 0x22c   : > { %2628 = vmatpush3.bf16.xpose.msra.mxu0 %v967_v37 }
 0x22d   : > { %2639 = vmatprep.subr.bf16.mxu0 %v2977_v7 }
 0x233   : > { %2630 = vmatmul.mubr.msk.bf16.vlgmr.msra.gmra.mrb[8].mxu0 %vm836_vm5, %v959_v38 }
 0x234   : > { %2643 = vmatprep.mubr.msk.bf16.mxu0 %vm2979_vm0, %v2977_v7  ;;  %2640 = vmatpush3.bf16.msra.mxu0 %v2777_v35 }
 0x235   : > { %2641 = vmatprep.subr.bf16.mxu0 %v2977_v7 }
 0x238   : > { %2642 = vmatpush3.bf16.msra.mxu0 %v2778_v36 }
 0x239   : > { %2655 = vmatprep.subr.bf16.mxu0 %v2977_v7 }
 0x293   : > { %v877_v43 = vpop.f32.mrb[4].mxu0 }
 0x294   : > { %v884_v44 = vmul.f32 0.17677669, %v877_v43  ;;  %v2619_v45 = vpop.f32.mrb[5].mxu0 }
 0x295   : > { %v880_v46 = vpop.f32.mrb[6].mxu0  ;;  %v2775_v45 = vld [vmem:[%s3669_s6] sm:$0xff]  }
 0x296   : > { %v885_v47 = vmul.f32 0.17677669, %v880_v46  ;;  %v2620_v48 = vpop.f32.mrb[7].mxu0  ;;  %v886_v49 = vadd.f32 %v884_v44, %v3273_v42 }
 0x298   : > { %v889_v50 = vsel %vm888_vm7, %v886_v49, -inf  ;;  %v887_v51 = vadd.f32 %v885_v47, %v3273_v42  ;;  %v2776_v47 = vld [vmem:[%s3669_s6 + $0x8] sm:$0xff]  }
 0x299   : > { %890 = vmax.xlane.f32.xlu1 %v889_v50 }
 0x29a   : > { %v892_v52 = vsel %vm888_vm7, %v887_v51, -inf }
 0x29b   : > { %893 = vmax.xlane.f32.xlu0 %v892_v52 }
 0x306   : > { %v1003_v53 = vpop.f32.mrb[8].mxu0 }
 0x307   : > { %v1010_v54 = vmul.f32 0.17677669, %v1003_v53  ;;  %v2631_v55 = vpop.f32.mrb[9].mxu0 }
 0x308   : > { %v1006_v56 = vpop.f32.mrb[10].mxu0 }
 0x309   : > { %v1011_v57 = vmul.f32 0.17677669, %v1006_v56  ;;  %v2632_v58 = vpop.f32.mrb[11].mxu0  ;;  %v1012_v59 = vadd.f32 %v1010_v54, %v3273_v42 }
 0x30b   : > { %v1014_v60 = vsel %vm888_vm7, %v1012_v59, -inf  ;;  %v1013_v61 = vadd.f32 %v1011_v57, %v3273_v42 }
 0x30c   : > { %1015 = vmax.xlane.f32.xlu0 %v1014_v60 }
 0x30d   : > { %v1017_v62 = vsel %vm888_vm7, %v1013_v61, -inf }
 0x30e   : > { %1018 = vmax.xlane.f32.xlu1 %v1017_v62 }
 0x326   : > { %v891_v63 = vpop.xlane.xlu1 %890 }
 0x327   : > { %v895_v2 = vsub.f32 %v886_v49, %v891_v63 }
 0x328   : > { %v894_v3 = vpop.xlane.xlu0 %893 }
 0x329   : > { %v897_v4 = vmul.f32 1.442695, %v895_v2  ;;  %v896_v5 = vsub.f32 %v887_v51, %v894_v3 }
 0x32b   : > { %2871 = vpow2.f32 %v897_v4  ;;  %v899_v6 = vmul.f32 1.442695, %v896_v5 }
 0x32d   : > { %2873 = vpow2.f32 %v899_v6 }
 0x335   : > { %v2872_v8 = vpop.eup %2871 }
 0x336   : > { %v901_v9 = vsel %vm888_vm7, %v2872_v8, 0.0 }
 0x337   : > { %v2874_v0 = vpop.eup %2873  ;;  %902 = vadd.xlane.f32.xlu0 %v901_v9 }
 0x338   : > { %v904_v12 = vsel %vm888_vm7, %v2874_v0, 0.0 }
 0x339   : > { %905 = vadd.xlane.f32.xlu1 %v904_v12 }
 0x399   : > { %v1016_v14 = vpop.xlane.xlu0 %1015 }
 0x39a   : > { %v1020_v15 = vsub.f32 %v1012_v59, %v1016_v14 }
 0x39b   : > { %v1019_v16 = vpop.xlane.xlu1 %1018 }
 0x39c   : > { %v1022_v17 = vmul.f32 1.442695, %v1020_v15  ;;  %v1021_v18 = vsub.f32 %v1013_v61, %v1019_v16 }
 0x39e   : > { %2875 = vpow2.f32 %v1022_v17  ;;  %v1024_v19 = vmul.f32 1.442695, %v1021_v18 }
 0x3a0   : > { %2877 = vpow2.f32 %v1024_v19 }
 0x3a8   : > { %v2876_v20 = vpop.eup %2875 }
 0x3a9   : > { %v1026_v21 = vsel %vm888_vm7, %v2876_v20, 0.0 }
 0x3aa   : > { %v2878_v22 = vpop.eup %2877  ;;  %1027 = vadd.xlane.f32.xlu0 %v1026_v21 }
 0x3ab   : > { %v1029_v23 = vsel %vm888_vm7, %v2878_v22, 0.0 }
 0x3ac   : > { %1030 = vadd.xlane.f32.xlu1 %v1029_v23 }
 0x3bd   : > { %1200 = vrot.lane.b32.xlu1 %v3248_v34, %s2982_s25 }
 0x3c0   : > { %1038 = vrot.lane.b32.xlu0 %v3246_v33, %s2980_s22 }
 0x3c1   : > { %1198 = vrot.lane.b32.xlu1 %v3244_v32, %s2982_s25 }
 0x3c4   : > { %v903_v25 = vpop.xlane.xlu0 %902 }
 0x3c5   : > { %2879 = vrcp.f32 %v903_v25 }
 0x3c6   : > { %v906_v26 = vpop.xlane.xlu1 %905 }
 0x3c7   : > { %2881 = vrcp.f32 %v906_v26 }
 0x3cf   : > { %v2880_v27 = vpop.eup %2879 }
 0x3d0   : > { %v909_v29 = vmul.f32 %v2880_v27, %v2872_v8 }
 0x3d1   : > { %v2882_v28 = vpop.eup %2881 }
 0x3d2   : > { %v910_v30 = vmul.f32 %v2882_v28, %v2874_v0 }
 0x3d4   : > { %v911_v31 = vpack.c.bf16 %v910_v30, %v909_v29 }
 0x3d6   : > { %2624 = vmatmul.mubr.msk.bf16.vlgmr.msra.gmra.mrb[4].mxu1 %vm888_vm7, %v911_v31 }
 0x3d7   : > { %2635 = vmatprep.mubr.msk.bf16.mxu1 %vm2979_vm0, %v2977_v7 }
 0x437   : > { %v1028_v37 = vpop.xlane.xlu0 %1027 }
 0x438   : > { %2883 = vrcp.f32 %v1028_v37 }
 0x439   : > { %v1031_v38 = vpop.xlane.xlu1 %1030 }
 0x43a   : > { %2885 = vrcp.f32 %v1031_v38 }
 0x43b   : > { %v1039_v39 = vpop.permute.xlu0 %1038 }
 0x43c   : > { %2634 = vmatpush3.bf16.msra.mxu1 %v1039_v39 }
 0x43d   : > { %2647 = vmatprep.subr.bf16.mxu1 %v2977_v7  ;;  %v1201_v55 = vpop.permute.xlu1 %1200 }
 0x43e   : > { %v1206_v59 = vsel %vm836_vm5, %v1201_v55, 0 }
 0x441   : > { %v1199_v60 = vpop.permute.xlu1 %1198 }
 0x442   : > { %v2884_v40 = vpop.eup %2883 }
 0x443   : > { %v1034_v43 = vmul.f32 %v2884_v40, %v2876_v20 }
 0x444   : > { %v2886_v41 = vpop.eup %2885 }
 0x445   : > { %v1035_v44 = vmul.f32 %v2886_v41, %v2878_v22 }
 0x447   : > { %v1036_v46 = vpack.c.bf16 %v1035_v44, %v1034_v43 }
 0x449   : > { %2636 = vmatmul.mubr.msk.bf16.vlgmr.msra.gmra.mrb[8].mxu1 %vm888_vm7, %v1036_v46 }
 0x44a   : > { %2648 = vmatpush3.bf16.msra.mxu1 %v2775_v45  ;;  %2651 = vmatprep.mubr.msk.bf16.mxu1 %vm2979_vm0, %v2977_v7 }
 0x44b   : > { %2649 = vmatprep.subr.bf16.mxu1 %v2977_v7 }
 0x44e   : > { %2650 = vmatpush3.bf16.msra.mxu1 %v2776_v47  ;;  %v2780_v47 = vld [vmem:[%s3669_s6 + $0x28] sm:$0xff]  }
 0x44f   : > { %2661 = vmatprep.subr.bf16.mxu1 %v2977_v7 }
 0x4a9   : > { %v949_v48 = vpop.f32.mrb[4].mxu1 }
 0x4aa   : > { %v2625_v49 = vpop.f32.mrb[5].mxu1 }
 0x4ab   : > { %v952_v50 = vpop.f32.mrb[6].mxu1 }
 0x4ac   : > { %v956_v51 = vpack.c.bf16 %v952_v50, %v949_v48  ;;  %v2626_v52 = vpop.f32.mrb[7].mxu1 }
 0x4ae   : > { %2652 = vmatmul.mubr.msk.bf16.vlgmr.msra.gmra.mrb[12].mxu1 %vm836_vm5, %v956_v51 }
 0x4af   : > { %2663 = vmatprep.mubr.msk.bf16.mxu1 %vm2979_vm0, %v2977_v7 }
 0x51c   : > { %v1078_v53 = vpop.f32.mrb[8].mxu1 }
 0x51d   : > { %v2637_v54 = vpop.f32.mrb[9].mxu1 }
 0x51e   : > { %v1081_v56 = vpop.f32.mrb[10].mxu1 }
 0x51f   : > { %v1085_v57 = vpack.c.bf16 %v1081_v56, %v1078_v53  ;;  %v2638_v58 = vpop.f32.mrb[11].mxu1 }
 0x521   : > { %2644 = vmatmul.mubr.msk.bf16.vlgmr.msra.gmra.mrb[12].mxu0 %vm836_vm5, %v1085_v57 }
 0x522   : > { %2656 = vmatpush3.bf16.xpose.msra.mxu0 %v1206_v59  ;;  %2657 = vmatprep.mubr.msk.bf16.mxu0 %vm2979_vm0, %v2977_v7 }
 0x523   : > { %2667 = vmatprep.subr.bf16.mxu0 %v2977_v7 }
 0x529   : > { %2658 = vmatmul.mubr.msk.bf16.vlgmr.msra.gmra.mrb[16].mxu0 %vm836_vm5, %v1199_v60 }
 0x52a   : > { %2671 = vmatprep.mubr.msk.bf16.mxu0 %vm2979_vm0, %v2977_v7 }
 0x581   : > { %v1191_v61 = vpop.f32.mrb[12].mxu1 }
 0x582   : > { %v2653_v62 = vpop.f32.mrb[13].mxu1 }
 0x583   : > { %v1194_v63 = vpop.f32.mrb[14].mxu1 }
 0x584   : > { %v2654_v2 = vpop.f32.mrb[15].mxu1 }
 0x5f4   : > { %v1135_v3 = vpop.f32.mrb[12].mxu0 }
 0x5f5   : > { %v3327_v4 = vadd.f32 %v1191_v61, %v1135_v3  ;;  %v2645_v5 = vpop.f32.mrb[13].mxu0 }
 0x5f6   : > { %v1138_v6 = vpop.f32.mrb[14].mxu0 }
 0x5f7   : > { %v3329_v8 = vadd.f32 %v1194_v63, %v1138_v6  ;;  %v2646_v9 = vpop.f32.mrb[15].mxu0 }
 0x5fc   : > { %v1242_v0 = vpop.f32.mrb[16].mxu0 }
 0x5fd   : > { %v1249_v12 = vmul.f32 0.17677669, %v1242_v0  ;;  %v2659_v14 = vpop.f32.mrb[17].mxu0 }
 0x5fe   : > { %v1245_v15 = vpop.f32.mrb[18].mxu0 }
 0x5ff   : > { %v1250_v16 = vmul.f32 0.17677669, %v1245_v15  ;;  %v2660_v17 = vpop.f32.mrb[19].mxu0  ;;  %v1251_v18 = vadd.f32 %v1249_v12, %v3273_v42 }
 0x601   : > { %v1253_v19 = vsel %vm888_vm7, %v1251_v18, -inf  ;;  %v1252_v20 = vadd.f32 %v1250_v16, %v3273_v42 }
 0x602   : > { %1254 = vmax.xlane.f32.xlu1 %v1253_v19 }
 0x603   : > { %v1256_v21 = vsel %vm888_vm7, %v1252_v20, -inf }
 0x604   : > { %1257 = vmax.xlane.f32.xlu0 %v1256_v21 }
 0x613   : > { %1276 = vrot.lane.b32.xlu1 %v3246_v33, %s2982_s25 }
 0x617   : > { %1382 = vrot.lane.b32.xlu1 %v3244_v32, %s2983_s20  ;;  %v2779_v32 = vld [vmem:[%s3669_s6 + $0x20] sm:$0xff]  }
 0x618   : > { %2668 = vmatpush3.bf16.msra.mxu0 %v2779_v32 }
 0x619   : > { %2669 = vmatprep.subr.bf16.mxu0 %v2977_v7 }
 0x61c   : > { %2670 = vmatpush3.bf16.msra.mxu0 %v2780_v47 }
 0x61d   : > { %2681 = vmatprep.subr.bf16.mxu0 %v2977_v7 }
 0x68f   : > { %v1255_v22 = vpop.xlane.xlu1 %1254 }
 0x690   : > { %v1259_v23 = vsub.f32 %v1251_v18, %v1255_v22 }
 0x691   : > { %v1258_v25 = vpop.xlane.xlu0 %1257 }
 0x692   : > { %v1261_v26 = vmul.f32 1.442695, %v1259_v23  ;;  %v1260_v27 = vsub.f32 %v1252_v20, %v1258_v25 }
 0x693   : > { %v1277_v28 = vpop.permute.xlu1 %1276 }
 0x694   : > { %2887 = vpow2.f32 %v1261_v26  ;;  %v1263_v29 = vmul.f32 1.442695, %v1260_v27  ;;  %2662 = vmatpush3.bf16.msra.mxu1 %v1277_v28 }
 0x695   : > { %2675 = vmatprep.subr.bf16.mxu1 %v2977_v7 }
 0x696   : > { %2889 = vpow2.f32 %v1263_v29 }
 0x69e   : > { %v2888_v30 = vpop.eup %2887 }
 0x69f   : > { %v1265_v31 = vsel %vm888_vm7, %v2888_v30, 0.0 }
 0x6a0   : > { %v2890_v35 = vpop.eup %2889  ;;  %1266 = vadd.xlane.f32.xlu0 %v1265_v31 }
 0x6a1   : > { %v1268_v36 = vsel %vm888_vm7, %v2890_v35, 0.0 }
 0x6a4   : > { %1269 = vadd.xlane.f32.xlu0 %v1268_v36 }
 0x6ba   : > { %1384 = vrot.lane.b32.xlu0 %v3248_v34, %s2983_s20  ;;  %v1383_v34 = vpop.permute.xlu1 %1382 }
 0x72d   : > { %v1267_v37 = vpop.xlane.xlu0 %1266 }
 0x72e   : > { %2891 = vrcp.f32 %v1267_v37 }
 0x731   : > { %v1270_v38 = vpop.xlane.xlu0 %1269 }
 0x732   : > { %2893 = vrcp.f32 %v1270_v38  ;;  %v2439_v38 = vld [vmem:[%s3670_s7] ss:$0 sm:$0xff] }
 0x735   : > { %v1385_v44 = vpop.permute.xlu0 %1384 }
 0x736   : > { %v1390_v46 = vsel %vm836_vm5, %v1385_v44, 0 }
 0x738   : > { %v2892_v39 = vpop.eup %2891 }
 0x739   : > { %v1273_v41 = vmul.f32 %v2892_v39, %v2888_v30 }
 0x73c   : > { %v2894_v40 = vpop.eup %2893 }
 0x73d   : > { %v1274_v43 = vmul.f32 %v2894_v40, %v2890_v35  ;;  %v2911_v40 = vld [vmem:[%s3118_s18] sm:$0xff] }
 0x73f   : > { %v1275_v45 = vpack.c.bf16 %v1274_v43, %v1273_v41 }
 0x741   : > { %2664 = vmatmul.mubr.msk.bf16.vlgmr.msra.gmra.mrb[16].mxu1 %vm888_vm7, %v1275_v45 }
 0x742   : > { %2676 = vmatpush3.bf16.xpose.msra.mxu1 %v1390_v46  ;;  %2677 = vmatprep.mubr.msk.bf16.mxu1 %vm2979_vm0, %v2977_v7  ;;  %v2912_v46 = vld [vmem:[%s3118_s18 + $0x8] sm:$0xff]  ;;  %s469_s18 = sand.u32 1, %s2967_s30  }
 0x743   : > { %2687 = vmatprep.subr.bf16.mxu1 %v2977_v7  ;;  %s2390_s25 = sshll.u32 %s469_s18, 4 }
 0x744   : > { %s471_s27 = scalar_lea.vmem [#allocation2], %s2390_s25  ;;  %s2917_s25 = sshll.u32 %s2984_s21, 4  ;;  %s2918_s25 = int_to_ptr.vmem [resolvable:$false] %s2917_s25 }
 0x745   : > { %s2315_s0 = sshll.u32 %s471_s27, 4  ;;  %s2919_s24 = scalar_lea.vmem %s2918_s25, 512  ;;  %s3614_s0 = int_to_ptr.vmem [resolvable:$true] %s2315_s0 }
 0x746   : > { %s2913_s17 = scalar_lea.vmem %s3614_s0, 256  ;;  %p2920_p0 = scmp.lt.s32.totalorder %s3614_s0, %s2918_s25 }
 0x747   : > { %p2914_p11 = scmp.ne.s32.totalorder %s3614_s0, %s2913_s17  ;;  %p2921_p1 = scmp.lt.s32.totalorder %s2919_s24, %s2913_s17 }
 0x749   : > { %2678 = vmatmul.mubr.msk.bf16.vlgmr.msra.gmra.mrb[20].mxu1 %vm836_vm5, %v1383_v34  ;;  %p2915_p12 = pnand %p2914_p11, %p3100_p5  ;;  %p2922_p2 = por %p2921_p1, %p2920_p0 }
 0x74a   : > { %2691 = vmatprep.mubr.msk.bf16.mxu1 %vm2979_vm0, %v2977_v7 }
 0x74b   : > { %p2916_p13 = pneg %p2915_p12 }
 0x74d   : > { %p2923_p3 = pnand %p2922_p2, %p2916_p13 }
 0x814   : > { %v1316_v48 = vpop.f32.mrb[16].mxu1 }
 0x815   : > { %v2665_v49 = vpop.f32.mrb[17].mxu1 }
 0x816   : > { %v1319_v50 = vpop.f32.mrb[18].mxu1  ;;  %v2785_v49 = vld [vmem:[%s3673_s10 + $0x4] ss:$16 sps:$4 sm:$0xff]  }
 0x817   : > { %v1323_v51 = vpack.c.bf16 %v1319_v50, %v1316_v48  ;;  %v2666_v52 = vpop.f32.mrb[19].mxu1  ;;  %v2788_v50 = vld [vmem:[%s3673_s10 + $0xc] ss:$16 sps:$4 sm:$0xff]  }
 0x818   : > { %v2786_v52 = vld [vmem:[%s3673_s10 + $0x8] ss:$16 sps:$4 sm:$0xff]  }
 0x819   : > { %2672 = vmatmul.mubr.msk.bf16.vlgmr.msra.gmra.mrb[20].mxu0 %vm836_vm5, %v1323_v51  ;;  %v2783_v51 = vld [vmem:[%s3673_s10] ss:$16 sps:$4 sm:$0xff]  }
 0x81a   : > { %2683 = vmatprep.mubr.msk.bf16.mxu0 %vm2979_vm0, %v2977_v7 }
 0x81c   : > { %v1426_v53 = vpop.f32.mrb[20].mxu1 }
 0x81d   : > { %v1433_v54 = vmul.f32 0.17677669, %v1426_v53  ;;  %v2679_v55 = vpop.f32.mrb[21].mxu1  ;;  %v2791_v53 = vld [vmem:[%s3673_s10 + $0x24] ss:$16 sps:$4 sm:$0xff]  }
 0x81e   : > { %v1429_v56 = vpop.f32.mrb[22].mxu1  ;;  %v2789_v55 = vld [vmem:[%s3673_s10 + $0x20] ss:$16 sps:$4 sm:$0xff]  }
 0x81f   : > { %v1434_v57 = vmul.f32 0.17677669, %v1429_v56  ;;  %v2680_v58 = vpop.f32.mrb[23].mxu1  ;;  %v1435_v59 = vadd.f32 %v1433_v54, %v3273_v42  ;;  %v2794_v54 = vld [vmem:[%s3673_s10 + $0x2c] ss:$16 sps:$4 sm:$0xff]  }
 0x820   : > { %v2792_v56 = vld [vmem:[%s3673_s10 + $0x28] ss:$16 sps:$4 sm:$0xff]   ;;  %v2800_v58 = vld [vmem:[%s3673_s10 + $0x4c] ss:$16 sps:$4 sm:$0xff]  }
 0x821   : > { %v1437_v60 = vsel %vm888_vm7, %v1435_v59, -inf  ;;  %v1436_v61 = vadd.f32 %v1434_v57, %v3273_v42  ;;  %v2781_v42 = vld [vmem:[%s3669_s6 + $0x30] sm:$0xff]  }
 0x822   : > { %1438 = vmax.xlane.f32.xlu1 %v1437_v60  ;;  %2688 = vmatpush3.bf16.msra.mxu1 %v2781_v42  ;;  %v2797_v57 = vld [vmem:[%s3673_s10 + $0x44] ss:$16 sps:$4 sm:$0xff]   ;;  %v2798_v60 = vld [vmem:[%s3673_s10 + $0x48] ss:$16 sps:$4 sm:$0xff]  }
 0x823   : > { %v1440_v62 = vsel %vm888_vm7, %v1436_v61, -inf  ;;  %2689 = vmatprep.subr.bf16.mxu1 %v2977_v7  ;;  %v2782_v7 = vld [vmem:[%s3669_s6 + $0x38] sm:$0xff]   ;;  %v2821_v42 = vld [vmem:[%s3673_s10 + $0xc4] ss:$16 sps:$4 sm:$0xff]  }
 0x824   : > { %1441 = vmax.xlane.f32.xlu0 %v1440_v62  ;;  %v2806_v62 = vld [vmem:[%s3673_s10 + $0x6c] ss:$16 sps:$4 sm:$0xff]  }
 0x826   : > { %2690 = vmatpush3.bf16.msra.mxu1 %v2782_v7 }
 0x827   : > { %1897 = vmatprep.subr.bf16.mxu1 %v2788_v50 }
 0x8af   : > { %v1439_v63 = vpop.xlane.xlu1 %1438 }
 0x8b0   : > { %v1443_v2 = vsub.f32 %v1435_v59, %v1439_v63  ;;  %v2795_v59 = vld [vmem:[%s3673_s10 + $0x40] ss:$16 sps:$4 sm:$0xff]  }
 0x8b1   : > { %v1442_v3 = vpop.xlane.xlu0 %1441  ;;  %v2801_v63 = vld [vmem:[%s3673_s10 + $0x60] ss:$16 sps:$4 sm:$0xff]  }
 0x8b2   : > { %v1445_v5 = vmul.f32 1.442695, %v1443_v2  ;;  %v1444_v6 = vsub.f32 %v1436_v61, %v1442_v3  ;;  %v2803_v61 = vld [vmem:[%s3673_s10 + $0x64] ss:$16 sps:$4 sm:$0xff]   ;;  %v2804_v2 = vld [vmem:[%s3673_s10 + $0x68] ss:$16 sps:$4 sm:$0xff]  }
 0x8b3   : > { %v2809_v3 = vld [vmem:[%s3673_s10 + $0x84] ss:$16 sps:$4 sm:$0xff]  }
 0x8b4   : > { %2895 = vpow2.f32 %v1445_v5  ;;  %v1447_v9 = vmul.f32 1.442695, %v1444_v6  ;;  %v2807_v5 = vld [vmem:[%s3673_s10 + $0x80] ss:$16 sps:$4 sm:$0xff]   ;;  %v2810_v6 = vld [vmem:[%s3673_s10 + $0x88] ss:$16 sps:$4 sm:$0xff]  }
 0x8b6   : > { %2897 = vpow2.f32 %v1447_v9  ;;  %v2812_v9 = vld [vmem:[%s3673_s10 + $0x8c] ss:$16 sps:$4 sm:$0xff]  }
 0x8be   : > { %v2896_v0 = vpop.eup %2895 }
 0x8bf   : > { %v1449_v12 = vsel %vm888_vm7, %v2896_v0, 0.0 }
 0x8c0   : > { %v2898_v14 = vpop.eup %2897  ;;  %1450 = vadd.xlane.f32.xlu0 %v1449_v12  ;;  %v2818_v12 = vld [vmem:[%s3673_s10 + $0xac] ss:$16 sps:$4 sm:$0xff]  }
 0x8c1   : > { %v1452_v15 = vsel %vm888_vm7, %v2898_v14, 0.0 }
 0x8c2   : > { %1453 = vadd.xlane.f32.xlu1 %v1452_v15  ;;  %v2816_v15 = vld [vmem:[%s3673_s10 + $0xa8] ss:$16 sps:$4 sm:$0xff]  }
 0x8d6   : > { %1460 = vrot.lane.b32.xlu0 %v3246_v33, %s2983_s20  ;;  %s3622_s20 = scalar_lea.sflag [#allocation3], %s469_s18 }
 0x8ec   : > { %v1373_v16 = vpop.f32.mrb[20].mxu0 }
 0x8ed   : > { %v1380_v17 = vadd.f32 %v1373_v16, %v3327_v4  ;;  %v2673_v18 = vpop.f32.mrb[21].mxu0  ;;  %v2824_v16 = vld [vmem:[%s3673_s10 + $0xcc] ss:$16 sps:$4 sm:$0xff]  }
 0x8ee   : > { %v1376_v19 = vpop.f32.mrb[22].mxu0  ;;  %v2822_v18 = vld [vmem:[%s3673_s10 + $0xc8] ss:$16 sps:$4 sm:$0xff]  }
 0x8ef   : > { %v1381_v20 = vadd.f32 %v1376_v19, %v3329_v8  ;;  %v2674_v21 = vpop.f32.mrb[23].mxu0  ;;  %v2827_v19 = vld [vmem:[%s3673_s10 + $0xe4] ss:$16 sps:$4 sm:$0xff]  }
 0x8f0   : > { %v2825_v21 = vld [vmem:[%s3673_s10 + $0xe0] ss:$16 sps:$4 sm:$0xff]  }
 0x94d   : > { %v1451_v22 = vpop.xlane.xlu0 %1450 }
 0x94e   : > { %2899 = vrcp.f32 %v1451_v22  ;;  %v2828_v22 = vld [vmem:[%s3673_s10 + $0xe8] ss:$16 sps:$4 sm:$0xff]  }
 0x94f   : > { %v1454_v23 = vpop.xlane.xlu1 %1453 }
 0x950   : > { %2901 = vrcp.f32 %v1454_v23  ;;  %v2831_v23 = vld [vmem:[%s3675_s12 + $0x40] sm:$0xff]  }
 0x951   : > { %v1461_v33 = vpop.permute.xlu0 %1460 }
 0x952   : > { %2682 = vmatpush3.bf16.msra.mxu0 %v1461_v33  ;;  %v2832_v33 = vld [vmem:[%s3675_s12 + $0xc0] sm:$0xff]  }
 0x953   : > { %1854 = vmatprep.subr.bf16.mxu0 %v2785_v49 }
 0x958   : > { %v2900_v25 = vpop.eup %2899 }
 0x959   : > { %v1457_v27 = vmul.f32 %v2900_v25, %v2896_v0  ;;  %v2815_v0 = vld [vmem:[%s3673_s10 + $0xa4] ss:$16 sps:$4 sm:$0xff]  }
 0x95a   : > { %v2902_v26 = vpop.eup %2901 }
 0x95b   : > { %v1458_v28 = vmul.f32 %v2902_v26, %v2898_v14  ;;  %v2813_v14 = vld [vmem:[%s3673_s10 + $0xa0] ss:$16 sps:$4 sm:$0xff]  }
 0x95d   : > { %v1459_v29 = vpack.c.bf16 %v1458_v28, %v1457_v27 }
 0x95f   : > { %2684 = vmatmul.mubr.msk.bf16.vlgmr.msra.gmra.mrb[24].mxu0 %vm888_vm7, %v1459_v29 }
 0x960   : > { %1886 = vmatprep.mubr.bf16.mxu0 %v2978_v24  ;;  %1855 = vmatpush1.bf16.msra.mxu0 %v2783_v51 }
 0x961   : > { %1856 = vmatprep.subr.bf16.mxu0 %v2791_v53 }
 0x964   : > { %1857 = vmatpush1.bf16.msra.mxu0 %v2789_v55 }
 0x965   : > { %1858 = vmatprep.subr.bf16.mxu0 %v2797_v57 }
 0x968   : > { %1859 = vmatpush1.bf16.msra.mxu0 %v2795_v59 }
 0x969   : > { %1860 = vmatprep.subr.bf16.mxu0 %v2803_v61  ;;  %v2441_v61 = vld [vmem:[%s3672_s9] ss:$0 sm:$0xff] }
 0x96c   : > { %1861 = vmatpush1.bf16.msra.mxu0 %v2801_v63 }
 0x96d   : > { %1862 = vmatprep.subr.bf16.mxu0 %v2809_v3  ;;  %v2833_v3 = vld [vmem:[%s3675_s12] sm:$0xff]  }
 0x970   : > { %1863 = vmatpush1.bf16.msra.mxu0 %v2807_v5  ;;  %v2834_v5 = vld [vmem:[%s3675_s12 + $0x80] sm:$0xff]  }
 0x971   : > { %1864 = vmatprep.subr.bf16.mxu0 %v2815_v0  ;;  %v2836_v0 = vld [vmem:[%s3675_s12 + $0xc8] sm:$0xff]  }
 0x974   : > { %1865 = vmatpush1.bf16.msra.mxu0 %v2813_v14  ;;  %v2838_v14 = vld [vmem:[%s3675_s12 + $0x88] sm:$0xff]  }
 0x975   : > { %1866 = vmatprep.subr.bf16.mxu0 %v2821_v42  ;;  %v2840_v42 = vld [vmem:[%s3675_s12 + $0xd0] sm:$0xff]  }
 0xa32   : > { %v1500_v4 = vpop.f32.mrb[24].mxu0 }
 0xa33   : > { %v2685_v8 = vpop.f32.mrb[25].mxu0 }
 0xa34   : > { %v1503_v30 = vpop.f32.mrb[26].mxu0 }
 0xa35   : > { %v1507_v31 = vpack.c.bf16 %v1503_v30, %v1500_v4  ;;  %v2686_v35 = vpop.f32.mrb[27].mxu0 }
 0xa37   : > { %2692 = vmatmul.mubr.msk.bf16.vlgmr.msra.gmra.mrb[24].mxu1 %vm836_vm5, %v1507_v31 }
 0xa38   : > { %1929 = vmatprep.mubr.bf16.mxu1 %v2978_v24  ;;  %1898 = vmatpush1.bf16.msra.mxu1 %v2786_v52 }
 0xa39   : > { %1899 = vmatprep.subr.bf16.mxu1 %v2794_v54  ;;  %v2440_v54 = vld [vmem:[%s3671_s8] ss:$0 sm:$0xff] }
 0xa3c   : > { %1900 = vmatpush1.bf16.msra.mxu1 %v2792_v56 }
 0xa3d   : > { %1901 = vmatprep.subr.bf16.mxu1 %v2800_v58 }
 0xa40   : > { %1902 = vmatpush1.bf16.msra.mxu1 %v2798_v60 }
 0xa41   : > { %1903 = vmatprep.subr.bf16.mxu1 %v2806_v62 }
 0xa44   : > { %1904 = vmatpush1.bf16.msra.mxu1 %v2804_v2 }
 0xa45   : > { %1905 = vmatprep.subr.bf16.mxu1 %v2812_v9  ;;  %v2835_v9 = vld [vmem:[%s3675_s12 + $0x48] sm:$0xff]  }
 0xa48   : > { %1906 = vmatpush1.bf16.msra.mxu1 %v2810_v6 }
 0xa49   : > { %1907 = vmatprep.subr.bf16.mxu1 %v2818_v12  ;;  %v2837_v12 = vld [vmem:[%s3675_s12 + $0x8] sm:$0xff]  }
 0xa4c   : > { %1908 = vmatpush1.bf16.msra.mxu1 %v2816_v15  ;;  %v2839_v15 = vld [vmem:[%s3675_s12 + $0x50] sm:$0xff]  }
 0xa4d   : > { %1909 = vmatprep.subr.bf16.mxu1 %v2824_v16  ;;  %v2841_v16 = vld [vmem:[%s3675_s12 + $0x10] sm:$0xff]  }
 0xa50   : > { %1910 = vmatpush1.bf16.msra.mxu1 %v2822_v18  ;;  %v2843_v18 = vld [vmem:[%s3675_s12 + $0x58] sm:$0xff]  }
 0xb0a   : > { %v1557_v36 = vpop.f32.mrb[24].mxu1 }
 0xb0b   : > { %v1564_v32 = vadd.f32 %v1557_v36, %v1380_v17  ;;  %v2693_v37 = vpop.f32.mrb[25].mxu1  ;;  %v2819_v17 = vld [vmem:[%s3673_s10 + $0xc0] ss:$16 sps:$4 sm:$0xff]  }
 0xb0c   : > { %v1560_v39 = vpop.f32.mrb[26].mxu1  ;;  %1867 = vmatpush1.bf16.msra.mxu0 %v2819_v17  ;;  %v2842_v17 = vld [vmem:[%s3675_s12 + $0x90] sm:$0xff]  }
 0xb0d   : > { %v1566_v41 = vadd.f32 %v2911_v40, %v1564_v32  ;;  %v1565_v43 = vadd.f32 %v1560_v39, %v1381_v20  ;;  %v2694_v44 = vpop.f32.mrb[27].mxu1  ;;  %v2830_v20 = vld [vmem:[%s3673_s10 + $0xec] ss:$16 sps:$4 sm:$0xff]   ;;  %1868 = vmatprep.subr.bf16.mxu0 %v2827_v19 }
 0xb0e   : > { %1911 = vmatprep.subr.bf16.mxu1 %v2830_v20  ;;  %v2844_v19 = vld [vmem:[%s3675_s12 + $0xd8] sm:$0xff]  }
 0xb0f   : > { %v3388_v45 = vadd.f32 %v2439_v38, %v1566_v41  ;;  %v1567_v34 = vadd.f32 %v2912_v46, %v1565_v43  ;;  %1912 = vmatpush1.bf16.msra.mxu1 %v2828_v22  ;;  %v2845_v20 = vld [vmem:[%s3675_s12 + $0x18] sm:$0xff]   ;;  %v2847_v22 = vld [vmem:[%s3675_s12 + $0x60] sm:$0xff]  }
 0xb10   : > { %1869 = vmatpush1.bf16.msra.mxu0 %v2825_v21  ;;  %2573 = vmatprep.subr.bf16.mxu1 %v2832_v33  ;;  %v2846_v21 = vld [vmem:[%s3675_s12 + $0x98] sm:$0xff]   ;;  %v2849_v33 = vld [vmem:[%s3675_s12 + $0x20] sm:$0xff]  }
 0xb11   : > { %1579 = vadd.xlane.f32.xlu1 %v3388_v45  ;;  %v3392_v47 = vadd.f32 %v2439_v38, %v1567_v34  ;;  %v1585_v24 = vmul.f32 %v3388_v45, %v3388_v45  ;;  %2551 = vmatprep.subr.bf16.mxu0 %v2831_v23  ;;  %v2848_v23 = vld [vmem:[%s3675_s12 + $0xe0] sm:$0xff]  }
 0xb13   : > { %v1586_v48 = vmul.f32 %v3392_v47, %v3392_v47 }
 0xb15   : > { %1581 = vadd.xlane.f32.xlu1 %v3392_v47 }
 0xb19   : > { %1587 = vadd.xlane.f32.xlu1 %v1585_v24 }
 0xb1d   : > { %1589 = vadd.xlane.f32.xlu1 %v1586_v48 }
 0xb9e   : > { %v1580_v25 = vpop.xlane.xlu1 %1579 }
 0xb9f   : > { %v1583_v27 = vmul.f32 0.0078125, %v1580_v25  ;;  %v2850_v25 = vld [vmem:[%s3675_s12 + $0xa0] sm:$0xff]  }
 0xba1   : > { %v1593_v29 = vmul.f32 %v1583_v27, %v1583_v27  ;;  %v1615_v53 = vsub.f32 %v3388_v45, %v1583_v27  ;;  %v2852_v27 = vld [vmem:[%s3675_s12 + $0xe8] sm:$0xff]  }
 0xba2   : > { %v1582_v26 = vpop.xlane.xlu1 %1581 }
 0xba3   : > { %v1584_v7 = vmul.f32 0.0078125, %v1582_v26  ;;  %v1623_v57 = vmul.f32 %v2440_v54, %v1615_v53  ;;  %v2851_v26 = vld [vmem:[%s3675_s12 + $0x68] sm:$0xff]  }
 0xba5   : > { %v1594_v31 = vmul.f32 %v1584_v7, %v1584_v7  ;;  %v1616_v55 = vsub.f32 %v3392_v47, %v1584_v7  ;;  %v2855_v7 = vld [vmem:[%s3675_s12 + $0x70] sm:$0xff]  }
 0xba6   : > { %v1588_v28 = vpop.xlane.xlu1 %1587 }
 0xba7   : > { %v1591_v4 = vmul.f32 0.0078125, %v1588_v28  ;;  %v1624_v58 = vmul.f32 %v2440_v54, %v1616_v55  ;;  %v2853_v28 = vld [vmem:[%s3675_s12 + $0x28] sm:$0xff]  }
 0xba9   : > { %v1595_v8 = vsub.f32 %v1591_v4, %v1593_v29  ;;  %v2854_v29 = vld [vmem:[%s3675_s12 + $0xa8] sm:$0xff]   ;;  %v2856_v4 = vld [vmem:[%s3675_s12 + $0xf0] sm:$0xff]  }
 0xbaa   : > { %v1590_v30 = vpop.xlane.xlu1 %1589 }
 0xbab   : > { %v1597_v35 = vmax.f32 %v1595_v8, 0.0  ;;  %v1592_v36 = vmul.f32 0.0078125, %v1590_v30  ;;  %v2857_v8 = vld [vmem:[%s3675_s12 + $0x30] sm:$0xff]  }
 0xbac   : > { %v2858_v30 = vld [vmem:[%s3675_s12 + $0xb0] sm:$0xff]  }
 0xbad   : > { %v1599_v32 = vmul.f32 1.007874, %v1597_v35  ;;  %v1596_v37 = vsub.f32 %v1592_v36, %v1594_v31  ;;  %v2859_v31 = vld [vmem:[%s3675_s12 + $0x78] sm:$0xff]  }
 0xbae   : > { %v2860_v35 = vld [vmem:[%s3675_s12 + $0xf8] sm:$0xff]  }
 0xbaf   : > { %2903 = vrsqrt.f32 %v1599_v32  ;;  %v1598_v38 = vmax.f32 %v1596_v37, 0.0  ;;  %vm1603_vm8 = vcmp.eq.f32.partialorder %v1599_v32, inf  ;;  %v1606_v43 = vand.u32 2147483648, %v1599_v32  ;;  %v2861_v36 = vld [vmem:[%s3675_s12 + $0x38] sm:$0xff]   ;;  %v1672_v37 = vld [vmem:[%s3674_s11] sm:$0xf] }
 0xbb0   : > { %vm1605_vm9 = vcmp.eq.f32.partialorder %v1599_v32, 0.0 }
 0xbb1   : > { %v1600_v39 = vmul.f32 1.007874, %v1598_v38  ;;  %v1688_v38 = vsub.s32 3, %v3229_v1 }
 0xbb3   : > { %2905 = vrsqrt.f32 %v1600_v39  ;;  %vm1610_vm10 = vcmp.eq.f32.partialorder %v1600_v39, inf  ;;  %v1613_v49 = vand.u32 2147483648, %v1600_v39  ;;  %vm1612_vm11 = vcmp.eq.f32.partialorder %v1600_v39, 0.0 }
 0xbb9   : > { %v2904_v40 = vpop.eup %2903 }
 0xbba   : > { %v1602_v41 = vmul.f32 %v2904_v40, %v1599_v32  ;;  %v1685_v40 = vrot.slane %v1672_v37, %v591_v11 }
 0xbbc   : > { %v1604_v44 = vsel %vm1603_vm8, %v1599_v32, %v1602_v41  ;;  %v2862_v32 = vld [vmem:[%s3675_s12 + $0xb8] sm:$0xff]   ;;  %v1681_v41 = vrot.slane %v1672_v37, %v587_v13 }
 0xbbd   : > { %v1607_v46 = vsel %vm1605_vm9, %v1606_v43, %v1604_v44  ;;  %v2906_v34 = vpop.eup %2905  ;;  %v1689_v43 = vrot.slane %v1672_v37, %v1688_v38 }
 0xbbe   : > { %v1625_v24 = vadd.f32 1e-06, %v1607_v46  ;;  %v1609_v48 = vmul.f32 %v2906_v34, %v1600_v39 }
 0xbc0   : > { %v1611_v50 = vsel %vm1610_vm10, %v1600_v39, %v1609_v48  ;;  %2907 = vrcp.f32 %v1625_v24  ;;  %v1677_v39 = vrot.slane %v1672_v37, %v3232_v10 }
 0xbc1   : > { %v1614_v51 = vsel %vm1612_vm11, %v1613_v49, %v1611_v50 }
 0xbc2   : > { %v1626_v52 = vadd.f32 1e-06, %v1614_v51 }
 0xbc4   : > { %2909 = vrcp.f32 %v1626_v52 }
 0xbca   : > { %v2908_v56 = vpop.eup %2907 }
 0xbcb   : > { %v1628_v59 = vmul.f32 %v2908_v56, %v1623_v57 }
 0xbcd   : > { %v1637_v63 = vadd.f32 %v2441_v61, %v1628_v59 }
 0xbce   : > { %v2910_v60 = vpop.eup %2909 }
 0xbcf   : > { %v1630_v62 = vmul.f32 %v2910_v60, %v1624_v58 }
 0xbd1   : > { %v1638_v2 = vadd.f32 %v2441_v61, %v1630_v62 }
 0xbd3   : > { %v1639_v6 = vpack.c.bf16 %v1638_v2, %v1637_v63 }
 0xbd5   : > { %1887 = vmatmul.mubr.bf16.vlgmr.msra.gmra.mrb[28].mxu0 %v1639_v6  ;;  %1930 = vmatmul.mubr.bf16.vlgmr.msra.gmra.mrb[28].mxu1 %v1639_v6 }
 0xbd6   : > { %2552 = vmatpush3.bf16.msra.mxu0 %v2833_v3  ;;  %2574 = vmatpush3.bf16.msra.mxu1 %v2834_v5 }
 0xbd7   : > { %2553 = vmatprep.subr.bf16.mxu0 %v2835_v9  ;;  %2575 = vmatprep.subr.bf16.mxu1 %v2836_v0 }
 0xbda   : > { %2554 = vmatpush3.bf16.msra.mxu0 %v2837_v12  ;;  %2576 = vmatpush3.bf16.msra.mxu1 %v2838_v14  ;;  %v2474_v12 = vld [vmem:[%s3676_s13] ss:$0 sm:$0xff] }
 0xbdb   : > { %2555 = vmatprep.subr.bf16.mxu0 %v2839_v15  ;;  %2577 = vmatprep.subr.bf16.mxu1 %v2840_v42 }
 0xbde   : > { %2556 = vmatpush3.bf16.msra.mxu0 %v2841_v16  ;;  %2578 = vmatpush3.bf16.msra.mxu1 %v2842_v17 }
 0xbdf   : > { %2557 = vmatprep.subr.bf16.mxu0 %v2843_v18  ;;  %2579 = vmatprep.subr.bf16.mxu1 %v2844_v19 }
 0xbe2   : > { %2558 = vmatpush3.bf16.msra.mxu0 %v2845_v20  ;;  %2580 = vmatpush3.bf16.msra.mxu1 %v2846_v21 }
 0xbe3   : > { %2559 = vmatprep.subr.bf16.mxu0 %v2847_v22  ;;  %2581 = vmatprep.subr.bf16.mxu1 %v2848_v23 }
 0xbe6   : > { %2560 = vmatpush3.bf16.msra.mxu0 %v2849_v33  ;;  %2582 = vmatpush3.bf16.msra.mxu1 %v2850_v25 }
 0xbe7   : > { %2561 = vmatprep.subr.bf16.mxu0 %v2851_v26  ;;  %2583 = vmatprep.subr.bf16.mxu1 %v2852_v27 }
 0xbea   : > { %2562 = vmatpush3.bf16.msra.mxu0 %v2853_v28  ;;  %2584 = vmatpush3.bf16.msra.mxu1 %v2854_v29 }
 0xbeb   : > { %2563 = vmatprep.subr.bf16.mxu0 %v2855_v7  ;;  %2585 = vmatprep.subr.bf16.mxu1 %v2856_v4 }
 0xbee   : > { %2564 = vmatpush3.bf16.msra.mxu0 %v2857_v8  ;;  %2586 = vmatpush3.bf16.msra.mxu1 %v2858_v30 }
 0xbef   : > { %2565 = vmatprep.subr.bf16.mxu0 %v2859_v31  ;;  %2587 = vmatprep.subr.bf16.mxu1 %v2860_v35 }
 0xbf2   : > { %2566 = vmatpush3.bf16.msra.mxu0 %v2861_v36  ;;  %2588 = vmatpush3.bf16.msra.mxu1 %v2862_v32 }
 0xca8   : > { %v1888_v44 = vpop.f32.mrb[28].mxu0  ;;  %v1931_v46 = vpop.f32.mrb[28].mxu1 }
 0xca9   : > { %v1889_v34 = vadd.f32 %v1888_v44, %v1677_v39  ;;  %v1932_v24 = vadd.f32 %v1931_v46, %v1685_v40  ;;  %v1890_v48 = vpop.f32.mrb[29].mxu0  ;;  %v1933_v49 = vpop.f32.mrb[29].mxu1 }
 0xcaa   : > { %v1891_v50 = vadd.f32 %v1890_v48, %v1681_v41  ;;  %v1934_v51 = vadd.f32 %v1933_v49, %v1689_v43  ;;  %v1892_v52 = vpop.f32.mrb[30].mxu0  ;;  %v1935_v53 = vpop.f32.mrb[30].mxu1 }
 0xcab   : > { %v1893_v54 = vadd.f32 %v1892_v52, %v1677_v39  ;;  %v1936_v55 = vadd.f32 %v1935_v53, %v1685_v40  ;;  %v1894_v10 = vpop.f32.mrb[31].mxu0  ;;  %v1937_v56 = vpop.f32.mrb[31].mxu1  ;;  %v1940_v58 = vmax.f32 %v1889_v34, 0.0  ;;  %v1942_v1 = vmax.f32 %v1932_v24, 0.0 }
 0xcac   : > { %v1895_v57 = vadd.f32 %v1894_v10, %v1681_v41  ;;  %v1938_v11 = vadd.f32 %v1937_v56, %v1689_v43  ;;  %v1941_v60 = vmax.f32 %v1891_v50, 0.0  ;;  %v1943_v61 = vmax.f32 %v1934_v51, 0.0 }
 0xcad   : > { %v1944_v13 = vmax.f32 %v1893_v54, 0.0  ;;  %v1946_v59 = vmax.f32 %v1936_v55, 0.0 }
 0xcae   : > { %v1945_v62 = vmax.f32 %v1895_v57, 0.0  ;;  %v1947_v63 = vmax.f32 %v1938_v11, 0.0 }
 0xcaf   : > { %v1948_v2 = vpack.c.bf16 %v1944_v13, %v1940_v58  ;;  %v1950_v3 = vpack.c.bf16 %v1946_v59, %v1942_v1 }
 0xcb0   : > { %v1949_v5 = vpack.c.bf16 %v1945_v62, %v1941_v60  ;;  %v1951_v6 = vpack.c.bf16 %v1947_v63, %v1943_v61 }
 0xcb2   : > { %2247 = vmatprep.mubr.bf16.mxu0 %v1949_v5  ;;  %2288 = vmatprep.mubr.bf16.mxu1 %v1951_v6 }
 0xcb3   : > { %2248 = vmatmul.mubr.bf16.vlgmr.msra.gmra.mrb[32].mxu0 %v1948_v2  ;;  %2289 = vmatmul.mubr.bf16.vlgmr.msra.gmra.mrb[32].mxu1 %v1950_v3 }
 0xd86   : > { %v2567_v9 = vpop.f32.mrb[32].mxu0  ;;  %v2589_v0 = vpop.f32.mrb[32].mxu1 }
 0xd87   : > { %v2568_v14 = vpop.f32.mrb[33].mxu0  ;;  %v2590_v15 = vpop.f32.mrb[33].mxu1 }
 0xd88   : > { %v2569_v42 = vadd.f32 %v2568_v14, %v2567_v9  ;;  %v2591_v16 = vadd.f32 %v2590_v15, %v2589_v0  ;;  %v2570_v17 = vpop.f32.mrb[34].mxu0  ;;  %v2592_v18 = vpop.f32.mrb[34].mxu1 }
 0xd89   : > { %v2571_v19 = vpop.f32.mrb[35].mxu0  ;;  %v2593_v20 = vpop.f32.mrb[35].mxu1 }
 0xd8a   : > { %v2250_v21 = vadd.f32 %v2569_v42, %v2474_v12  ;;  %v2572_v22 = vadd.f32 %v2571_v19, %v2570_v17  ;;  %v2594_v23 = vadd.f32 %v2593_v20, %v2592_v18 }
 0xd8c   : > { %v2291_v33 = vadd.f32 %v2591_v16, %v2250_v21  ;;  %v2253_v25 = vadd.f32 %v2572_v22, %v2474_v12 }
 0xd8e   : > { %v2297_v26 = vadd.f32 %v2291_v33, %v3388_v45  ;;  %v2294_v27 = vadd.f32 %v2594_v23, %v2253_v25 }
 0xd90   : > { %2299 = vst [vmem:[%s471_s27] sm:$0xff] %v2297_v26  ;;  %v2298_v28 = vadd.f32 %v2294_v27, %v3392_v47 }
 0xd92   : > { %2300 = vst [vmem:[%s471_s27 + $0x8] sm:$0xff] %v2298_v28 }
 0xd93   : > { %2926 = shalt.err (!%p2923_p3)
}
 0xd94   : > { %s2927_s18 = scalar_lea.hbm %s3619_s19, 256  ;;  %s2931_s28 = scalar_lea.hbm %s3677_s14, 512 }
 0xd95   : > { %p2928_p4 = scmp.ne.s32.totalorder %s3619_s19, %s2927_s18  ;;  %p2932_p9 = scmp.lt.u32.totalorder %s3619_s19, %s3677_s14 }
 0xd96   : > { %p2933_p10 = scmp.lt.u32.totalorder %s2931_s28, %s2927_s18  ;;  %p2935_p12 = scmp.lt.u32.totalorder %s2927_s18, %s3619_s19 }
 0xd97   : > { %p2929_p7 = pnand %p2928_p4, %p3100_p5 }
 0xd98   : > { %p2934_p11 = por %p2933_p10, %p2932_p9 }
 0xd99   : > { %p2930_p8 = pneg %p2929_p7 }
 0xd9a   : > { %p2936_p13 = por %p2935_p12, %p2934_p11 }
 0xd9c   : > { %p2937_p0 = pnand %p2936_p13, %p2930_p8 }
 0xd9e   : > { %2940 = shalt.err (!%p2937_p0)
}
 0xd9f   : > { %s2985_s17 = smov 128   ;;  %s2986_s21 = smov 8  }
 0xda0   : > { %2695 = dma.vmem_to_hbm [thread:$0]  (%p3100_p5), %s3614_s0, 256, %s3619_s19, %s3622_s20, %s2985_s17, %s2985_s17, %s2986_s21  }
 0xda1 PF: > { %p2701_p1 = scmp.ge.s32.totalorder %s2975_s16, 2  ;;  %s2330_s24 = sand.u32 1, %s2963_s29  }
 0xda2   : > { %s2331_s18 = scalar_lea.sflag [#allocation3], %s2330_s24 }
 0xda3   : > { %p2698_p2 = pnand %p2701_p1, %p3104_p6 }
 0xda5   : > { %2958 = dma.done.wait (!%p2698_p2), %s2331_s18, 256  }
 0xda6   : > { %2960 = vsyncadd (!%p2698_p2), %s2331_s18, 4294967040  ;;  %s3691_s16 = sld [smem:[#allocation6_spill]]  ;;  %s3692_s26 = sld [smem:[#allocation5_spill]] }
 0xda7   : > { %s3693_s15 = sld [smem:[#allocation7_spill]]  ;;  %s3694_s29 = smov %s2967_s30 }
 0xdac   : > { %p24_p3 = scmp.ge.s32.totalorder %s3691_s16, 4   ;;  %s3695_s30 = smov %s3692_s26 }
 0xdae   :  { %26 = sbr.rel (!%p24_p3) target bundleno = 5 (0x5), region = 114 }
 0xdb5   :  { %2336 = vsyncpa [#allocation3], 1 }
 0xdb6   :  { %2338 = vsyncpa [#allocation3 + $0x1], 1 }

</bundles_post_ra>
